<compile_context>
chip_gen: v5e
topology: v5e:2x2
jax: 0.10.0
libtpu: 0.0.40
codegen_flags: <defaults>
</compile_context>

<pallas_src>
import jax
import jax.numpy as jnp
from jax.experimental import pallas as pl
from jax.experimental.pallas import tpu as pltpu

IN_F = 768
HID = 512
OUT_F = 1


def _round_up(n, m):
    return ((n + m - 1) // m) * m


def _gelu_exact(x):
    # PyTorch nn.GELU() default = exact erf-based GELU.
    return 0.5 * x * (1.0 + jax.lax.erf(x * (1.0 / jnp.sqrt(2.0).astype(x.dtype))))


def _mlp_kernel(x_ref, w1_ref, b1_ref, w2_ref, b2_ref, w3_ref, b3_ref, o_ref):
    x = x_ref[...]                                     # (TB, 768) bf16

    # Linear(768 -> 512) + GELU   (Dropout = identity in eval)
    h1 = jnp.dot(x, w1_ref[...], preferred_element_type=jnp.float32)
    h1 = _gelu_exact(h1 + b1_ref[...])                 # f32, b1 (1,512) broadcasts

    # Linear(512 -> 512) + GELU   (bf16 LHS/RHS, f32 accumulation)
    h2 = jnp.dot(h1.astype(jnp.bfloat16), w2_ref[...],
                 preferred_element_type=jnp.float32)
    h2 = _gelu_exact(h2 + b2_ref[...])

    # Linear(512 -> 1) + Tanh as VPU multiply + lane reduction (skip N=1 MXU pass)
    w3 = w3_ref[...].astype(jnp.float32)               # (1, 512) row
    h3 = jnp.sum(h2 * w3, axis=-1, keepdims=True) + b3_ref[...]   # (TB, 1)
    o_ref[...] = jnp.tanh(h3).astype(o_ref.dtype)


def subcortical_pathway_forward(x, params, *, block_b=512):
    """x: any shape (B, ...) whose trailing dims flatten to 768. Returns (B, 1) f32."""
    b = x.shape[0]
    x2 = x.reshape(b, -1)
    assert x2.shape[1] == IN_F, f"expected flattened feature dim {IN_F}, got {x2.shape[1]}"
    x2 = x2.astype(jnp.bfloat16)

    w1, b1, w2, b2, w3, b3 = params
    w1 = w1.astype(jnp.bfloat16)
    w2 = w2.astype(jnp.bfloat16)
    w3 = w3.astype(jnp.bfloat16)                       # stored as a (1, 512) row
    b1 = b1.astype(jnp.float32)
    b2 = b2.astype(jnp.float32)
    b3 = b3.astype(jnp.float32)

    # Batch tile: multiple of 8 sublanes; cap so live VMEM (x tile x2 buffers +
    # f32 h1/h2 temporaries + resident bf16 weights) stays well under the
    # smallest default scoped VMEM (v5e 16 MiB).
    tb = min(block_b, _round_up(b, 8))
    b_pad = _round_up(b, tb)
    if b_pad != b:
        x2 = jnp.pad(x2, ((0, b_pad - b), (0, 0)))

    grid = (b_pad // tb,)

    flops = 2 * b_pad * (IN_F * HID + HID * HID + HID)
    transcendentals = b_pad * (2 * HID + 1)            # 2x GELU layers + tanh
    bytes_accessed = (
        (IN_F * HID + HID * HID + HID) * 2             # bf16 weights
        + (2 * HID + OUT_F) * 4                        # f32 biases
        + b_pad * IN_F * 2                             # bf16 activations in
        + b_pad * OUT_F * 4)                           # f32 output

    out = pl.pallas_call(
        _mlp_kernel,
        out_shape=jax.ShapeDtypeStruct((b_pad, OUT_F), jnp.float32),
        grid_spec=pltpu.PrefetchScalarGridSpec(
            num_scalar_prefetch=0,
            grid=grid,
            in_specs=[
                pl.BlockSpec((tb, IN_F), lambda i: (i, 0)),      # x tiled over batch
                pl.BlockSpec((IN_F, HID), lambda i: (0, 0)),     # weights resident
                pl.BlockSpec((1, HID), lambda i: (0, 0)),
                pl.BlockSpec((HID, HID), lambda i: (0, 0)),
                pl.BlockSpec((1, HID), lambda i: (0, 0)),
                pl.BlockSpec((1, HID), lambda i: (0, 0)),        # w3 as (1, 512) row
                pl.BlockSpec((1, OUT_F), lambda i: (0, 0)),
            ],
            out_specs=pl.BlockSpec((tb, OUT_F), lambda i: (i, 0)),
        ),
        compiler_params=pltpu.CompilerParams(
            dimension_semantics=("parallel",),
            vmem_limit_bytes=32 * 1024 * 1024,
        ),
        cost_estimate=pl.CostEstimate(
            flops=flops,
            transcendentals=transcendentals,
            bytes_accessed=bytes_accessed,
        ),
    )(x2, w1, b1, w2, b2, w3, b3)

    return out[:b]


def init_params(key):
    """Deterministic init mimicking PyTorch Linear default (U[-1/sqrt(fan_in), +...])."""
    k1, k2, k3, k4, k5, k6 = jax.random.split(key, 6)

    def lin(kw, kb, fan_in, fan_out):
        bound = 1.0 / jnp.sqrt(jnp.float32(fan_in))
        # first two layers stored as (in, out) so the kernel does x @ W
        w = jax.random.uniform(kw, (fan_in, fan_out), jnp.float32, -bound, bound)
        b_ = jax.random.uniform(kb, (1, fan_out), jnp.float32, -bound, bound)
        return w, b_

    w1, b1 = lin(k1, k2, IN_F, HID)
    w2, b2 = lin(k3, k4, HID, HID)
    # last layer stored as a (1, HID) row (PyTorch's native (out,in) layout),
    # used as a broadcast-multiply + lane reduction in the kernel.
    bound3 = 1.0 / jnp.sqrt(jnp.float32(HID))
    w3 = jax.random.uniform(k5, (1, HID), jnp.float32, -bound3, bound3)
    b3 = jax.random.uniform(k6, (1, OUT_F), jnp.float32, -bound3, bound3)
    return (w1, b1, w2, b2, w3, b3)


def _reference(x, params):
    """Pure-JAX reference mirroring the kernel's bf16 casts (f32 accumulation)."""
    w1, b1, w2, b2, w3, b3 = params
    h = x.reshape(x.shape[0], -1).astype(jnp.bfloat16)
    h1 = jax.nn.gelu(
        jnp.dot(h, w1.astype(jnp.bfloat16), preferred_element_type=jnp.float32)
        + b1.astype(jnp.float32), approximate=False)
    h2 = jax.nn.gelu(
        jnp.dot(h1.astype(jnp.bfloat16), w2.astype(jnp.bfloat16),
                preferred_element_type=jnp.float32)
        + b2.astype(jnp.float32), approximate=False)
    w3f = w3.astype(jnp.bfloat16).astype(jnp.float32)
    h3 = jnp.sum(h2 * w3f, axis=-1, keepdims=True) + b3.astype(jnp.float32)
    return jnp.tanh(h3)


if __name__ == "__main__":
    key = jax.random.PRNGKey(0)
    kx, kp = jax.random.split(key)

    # Small example input: batch=2, features flatten to 768 (e.g. (2, 12, 64)).
    x = jax.random.normal(kx, (2, 12, 64), dtype=jnp.float32)
    params = init_params(kp)

    out = subcortical_pathway_forward(x, params)
    out = jax.block_until_ready(out)

    ref = _reference(x, params)
    assert out.shape == (2, 1), out.shape
    assert jnp.allclose(out, ref, atol=2e-3, rtol=2e-3), (out, ref)

    print("KERNEL_OK")
</pallas_src>

<mosaic_0001>
module attributes {stable_mosaic.version = 11 : i64} {
  func.func @_mlp_kernel(%arg0: i32, %arg1: memref<8x768xbf16, #tpu.memory_space<vmem>>, %arg2: memref<768x512xbf16, #tpu.memory_space<vmem>>, %arg3: memref<1x512xf32, #tpu.memory_space<vmem>>, %arg4: memref<512x512xbf16, #tpu.memory_space<vmem>>, %arg5: memref<1x512xf32, #tpu.memory_space<vmem>>, %arg6: memref<1x512xbf16, #tpu.memory_space<vmem>>, %arg7: memref<1x1xf32, #tpu.memory_space<vmem>>, %arg8: memref<8x1xf32, #tpu.memory_space<vmem>>) attributes {dimension_semantics = [#tpu.dimension_semantics<parallel>], iteration_bounds = array<i64: 1>, scalar_prefetch = 0 : i64, scratch_operands = 0 : i64, tpu.core_type = #tpu.core_type<tc>, window_params = [{transform_indices = @transform_0, window_bounds = array<i64: 8, 768>}, {pipeline_mode = #tpu.pipeline_mode<synchronous>, transform_indices = @transform_1, window_bounds = array<i64: 768, 512>}, {pipeline_mode = #tpu.pipeline_mode<synchronous>, transform_indices = @transform_2, window_bounds = array<i64: 1, 512>}, {pipeline_mode = #tpu.pipeline_mode<synchronous>, transform_indices = @transform_3, window_bounds = array<i64: 512, 512>}, {pipeline_mode = #tpu.pipeline_mode<synchronous>, transform_indices = @transform_4, window_bounds = array<i64: 1, 512>}, {pipeline_mode = #tpu.pipeline_mode<synchronous>, transform_indices = @transform_5, window_bounds = array<i64: 1, 512>}, {pipeline_mode = #tpu.pipeline_mode<synchronous>, transform_indices = @transform_6, window_bounds = array<i64: 1, 1>}, {transform_indices = @transform_7, window_bounds = array<i64: 8, 1>}]} {
    %c0 = arith.constant 0 : index
    %c0_0 = arith.constant 0 : index
    %0 = vector.load %arg1[%c0, %c0_0] : memref<8x768xbf16, #tpu.memory_space<vmem>>, vector<8x768xbf16>
    %c0_1 = arith.constant 0 : index
    %c0_2 = arith.constant 0 : index
    %1 = vector.load %arg2[%c0_1, %c0_2] : memref<768x512xbf16, #tpu.memory_space<vmem>>, vector<768x512xbf16>
    %cst = arith.constant dense<0.000000e+00> : vector<8x512xf32>
    %2 = tpu.matmul %0, %1, %cst {dimension_numbers = #tpu.dot_dimension_numbers<[1], [0], [0], [1], [0, 0, 1, 1], [], []>} : vector<8x768xbf16>, vector<768x512xbf16>, vector<8x512xf32> -> vector<8x512xf32>
    %c0_3 = arith.constant 0 : index
    %c0_4 = arith.constant 0 : index
    %3 = vector.load %arg3[%c0_3, %c0_4] : memref<1x512xf32, #tpu.memory_space<vmem>>, vector<1x512xf32>
    %4 = vector.broadcast %3 : vector<1x512xf32> to vector<8x512xf32>
    %5 = arith.addf %2, %4 : vector<8x512xf32>
    %cst_5 = arith.constant 5.000000e-01 : f32
    %6 = vector.broadcast %cst_5 : f32 to vector<8x512xf32>
    %7 = arith.mulf %6, %5 : vector<8x512xf32>
    %cst_6 = arith.constant 2.000000e+00 : f32
    %8 = math.sqrt %cst_6 : f32
    %cst_7 = arith.constant 1.000000e+00 : f32
    %9 = arith.divf %cst_7, %8 : f32
    %10 = vector.broadcast %9 : f32 to vector<8x512xf32>
    %11 = arith.mulf %5, %10 : vector<8x512xf32>
    %12 = math.erf %11 : vector<8x512xf32>
    %cst_8 = arith.constant 1.000000e+00 : f32
    %13 = vector.broadcast %cst_8 : f32 to vector<8x512xf32>
    %14 = arith.addf %13, %12 : vector<8x512xf32>
    %15 = arith.mulf %7, %14 : vector<8x512xf32>
    %16 = arith.truncf %15 : vector<8x512xf32> to vector<8x512xbf16>
    %c0_9 = arith.constant 0 : index
    %c0_10 = arith.constant 0 : index
    %17 = vector.load %arg4[%c0_9, %c0_10] : memref<512x512xbf16, #tpu.memory_space<vmem>>, vector<512x512xbf16>
    %cst_11 = arith.constant dense<0.000000e+00> : vector<8x512xf32>
    %18 = tpu.matmul %16, %17, %cst_11 {dimension_numbers = #tpu.dot_dimension_numbers<[1], [0], [0], [1], [0, 0, 1, 1], [], []>} : vector<8x512xbf16>, vector<512x512xbf16>, vector<8x512xf32> -> vector<8x512xf32>
    %c0_12 = arith.constant 0 : index
    %c0_13 = arith.constant 0 : index
    %19 = vector.load %arg5[%c0_12, %c0_13] : memref<1x512xf32, #tpu.memory_space<vmem>>, vector<1x512xf32>
    %20 = vector.broadcast %19 : vector<1x512xf32> to vector<8x512xf32>
    %21 = arith.addf %18, %20 : vector<8x512xf32>
    %cst_14 = arith.constant 5.000000e-01 : f32
    %22 = vector.broadcast %cst_14 : f32 to vector<8x512xf32>
    %23 = arith.mulf %22, %21 : vector<8x512xf32>
    %cst_15 = arith.constant 2.000000e+00 : f32
    %24 = math.sqrt %cst_15 : f32
    %cst_16 = arith.constant 1.000000e+00 : f32
    %25 = arith.divf %cst_16, %24 : f32
    %26 = vector.broadcast %25 : f32 to vector<8x512xf32>
    %27 = arith.mulf %21, %26 : vector<8x512xf32>
    %28 = math.erf %27 : vector<8x512xf32>
    %cst_17 = arith.constant 1.000000e+00 : f32
    %29 = vector.broadcast %cst_17 : f32 to vector<8x512xf32>
    %30 = arith.addf %29, %28 : vector<8x512xf32>
    %31 = arith.mulf %23, %30 : vector<8x512xf32>
    %c0_18 = arith.constant 0 : index
    %c0_19 = arith.constant 0 : index
    %32 = vector.load %arg6[%c0_18, %c0_19] : memref<1x512xbf16, #tpu.memory_space<vmem>>, vector<1x512xbf16>
    %33 = arith.extf %32 : vector<1x512xbf16> to vector<1x512xf32>
    %34 = vector.broadcast %33 : vector<1x512xf32> to vector<8x512xf32>
    %35 = arith.mulf %31, %34 : vector<8x512xf32>
    %cst_20 = arith.constant dense<0.000000e+00> : vector<8xf32>
    %36 = vector.multi_reduction <add>, %35, %cst_20 [1] : vector<8x512xf32> to vector<8xf32>
    %37 = vector.shape_cast %36 : vector<8xf32> to vector<8x1xf32>
    %c0_21 = arith.constant 0 : index
    %c0_22 = arith.constant 0 : index
    %38 = vector.load %arg7[%c0_21, %c0_22] : memref<1x1xf32, #tpu.memory_space<vmem>>, vector<1x1xf32>
    %39 = vector.broadcast %38 : vector<1x1xf32> to vector<8x1xf32>
    %40 = arith.addf %37, %39 : vector<8x1xf32>
    %41 = math.tanh %40 : vector<8x1xf32>
    %c0_23 = arith.constant 0 : index
    %c0_24 = arith.constant 0 : index
    %42 = vector.load %arg8[%c0_23, %c0_24] : memref<8x1xf32, #tpu.memory_space<vmem>>, vector<8x1xf32>
    tpu.vector_store %arg8[%c0_23, %c0_24], %41 {strides = array<i32>} : memref<8x1xf32, #tpu.memory_space<vmem>>, vector<8x1xf32>,
    return
  }
  func.func @transform_0(%arg0: i32) -> (i32, i32) {
    %c0_i32 = arith.constant 0 : i32
    %c0_i32_0 = arith.constant 0 : i32
    return %arg0, %c0_i32 : i32, i32
  }
  func.func @transform_1(%arg0: i32) -> (i32, i32) {
    %c0_i32 = arith.constant 0 : i32
    %c0_i32_0 = arith.constant 0 : i32
    %c0_i32_1 = arith.constant 0 : i32
    return %c0_i32, %c0_i32_0 : i32, i32
  }
  func.func @transform_2(%arg0: i32) -> (i32, i32) {
    %c0_i32 = arith.constant 0 : i32
    %c0_i32_0 = arith.constant 0 : i32
    %c0_i32_1 = arith.constant 0 : i32
    return %c0_i32, %c0_i32_0 : i32, i32
  }
  func.func @transform_3(%arg0: i32) -> (i32, i32) {
    %c0_i32 = arith.constant 0 : i32
    %c0_i32_0 = arith.constant 0 : i32
    %c0_i32_1 = arith.constant 0 : i32
    return %c0_i32, %c0_i32_0 : i32, i32
  }
  func.func @transform_4(%arg0: i32) -> (i32, i32) {
    %c0_i32 = arith.constant 0 : i32
    %c0_i32_0 = arith.constant 0 : i32
    %c0_i32_1 = arith.constant 0 : i32
    return %c0_i32, %c0_i32_0 : i32, i32
  }
  func.func @transform_5(%arg0: i32) -> (i32, i32) {
    %c0_i32 = arith.constant 0 : i32
    %c0_i32_0 = arith.constant 0 : i32
    %c0_i32_1 = arith.constant 0 : i32
    return %c0_i32, %c0_i32_0 : i32, i32
  }
  func.func @transform_6(%arg0: i32) -> (i32, i32) {
    %c0_i32 = arith.constant 0 : i32
    %c0_i32_0 = arith.constant 0 : i32
    %c0_i32_1 = arith.constant 0 : i32
    return %c0_i32, %c0_i32_0 : i32, i32
  }
  func.func @transform_7(%arg0: i32) -> (i32, i32) {
    %c0_i32 = arith.constant 0 : i32
    %c0_i32_0 = arith.constant 0 : i32
    return %arg0, %c0_i32 : i32, i32
  }
}

</mosaic_0001>

<bundles_post_ra>
// kernel: tpu_custom_call.1
= control target key start
LH: loop header
LB: loop body
LE: loop exit
PB: predicated region body
PF: predicated region fallthrough
CT: control target
= control target key end

     0   :  { %s5077_s0 = inlined_call_operand.hbm [shape: bf16[8,768], index: 0, kind: input, shape index: {}]   ;;  %s5078_s1 = inlined_call_operand.hbm [shape: bf16[768,512], index: 1, kind: input, shape index: {}]   ;;  %s5079_s2 = inlined_call_operand.hbm [shape: f32[1,512], index: 2, kind: input, shape index: {}]   ;;  %s5080_s3 = inlined_call_operand.hbm [shape: bf16[512,512], index: 3, kind: input, shape index: {}]   ;;  %s5081_s4 = inlined_call_operand.vmem [shape: f32[1,512], index: 4, kind: input, shape index: {}]   ;;  %s5082_s5 = inlined_call_operand.hbm [shape: bf16[1,512], index: 5, kind: input, shape index: {}]   ;;  %s5083_s6 = inlined_call_operand.<no memory space> [shape: f32[1,1], index: 6, kind: input, shape index: {}]   ;;  %s5084_s7 = inlined_call_operand.vmem [shape: f32[8,1], index: 7, kind: output, shape index: {}]  }
   0x1   :  { %v12_v0 = vstv %s5083_s6 }
   0x2   :  { %13 = vst [vmem:[#allocation2] sm:$0x1] %v12_v0 }
   0x3   :  { %14 = vsyncpa [#allocation4], 0 }
   0x4   :  { %15 = vsyncpa [#allocation6], 0  ;;  %s32_s28 = sshll.u32 %s5078_s1, 4  ;;  %s33_s28 = int_to_ptr.hbm [resolvable:$true] %s32_s28 }
   0x5   :  { %16 = vsyncpa [#allocation9], 0  ;;  %s4739_s29 = smov [#allocation5]   ;;  %s56_s10 = sshll.u32 %s5080_s3, 4  ;;  %s57_s10 = int_to_ptr.hbm [resolvable:$true] %s56_s10 }
   0x6   :  { %s34_s30 = sshll.u32 %s4739_s29, 4  ;;  %s4740_s11 = smov 256   ;;  %s35_s30 = int_to_ptr.vmem [resolvable:$true] %s34_s30 }
   0x7   :  { %s4741_s12 = smov 16   ;;  %s4742_s6 = smov [#allocation8]  }
   0x8   :  { %40 = dma.hbm_to_vmem [thread:$0]  %s33_s28, 24576, %s35_s30, [#allocation6], %s4740_s11, %s4740_s11, %s4741_s12  }
   0x9   :  { %s58_s13 = sshll.u32 %s4742_s6, 4  ;;  %s22_s16 = sshll.u32 %s5077_s0, 4  ;;  %s59_s13 = int_to_ptr.vmem [resolvable:$true] %s58_s13  ;;  %s23_s16 = int_to_ptr.hbm [resolvable:$true] %s22_s16 }
   0xa   :  { %64 = dma.hbm_to_vmem [thread:$0]  %s57_s10, 16384, %s59_s13, [#allocation9], %s4740_s11, %s4740_s11, %s4741_s12  }
   0xb   :  { %s46_s18 = sshll.u32 %s5079_s2, 4  ;;  %s4743_s19 = smov [#allocation3]   ;;  %s47_s18 = int_to_ptr.hbm [resolvable:$true] %s46_s18 }
   0xc   :  { %s24_s20 = sshll.u32 %s4743_s19, 4  ;;  %s4744_s3 = smov [#allocation7]   ;;  %s25_s20 = int_to_ptr.vmem [resolvable:$true] %s24_s20 }
   0xd   :  { %27 = dma.hbm_to_vmem [thread:$0]  %s23_s16, 384, %s25_s20, [#allocation4]  }
   0xe   :  { %s48_s21 = sshll.u32 %s4744_s3, 4  ;;  %s72_s24 = sshll.u32 %s5082_s5, 4  ;;  %s49_s21 = int_to_ptr.vmem [resolvable:$true] %s48_s21  ;;  %s73_s24 = int_to_ptr.hbm [resolvable:$true] %s72_s24 }
   0xf   :  { %51 = dma.hbm_to_vmem [thread:$0]  %s47_s18, 64, %s49_s21, [#allocation6]  }
  0x10   :  { %s4745_s0 = smov [#allocation10]  }
  0x11   :  { %s74_s25 = sshll.u32 %s4745_s0, 4  ;;  %s75_s25 = int_to_ptr.vmem [resolvable:$true] %s74_s25 }
  0x12   :  { %77 = dma.hbm_to_vmem [thread:$0]  %s73_s24, 64, %s75_s25, [#allocation9]  }
  0x13   :  { %4733 = dma.done.wait [#allocation4], 384  }
  0x14   :  { %4734 = vsyncadd [#allocation4], 4294966912 }
  0x15   :  { %4735 = dma.done.wait [#allocation6], 24640  }
  0x16   :  { %4736 = vsyncadd [#allocation6], 4294942656 }
  0x17   :  { %4737 = dma.done.wait [#allocation9], 16448  }
  0x18   :  { %4738 = vsyncadd [#allocation9], 4294950848  ;;  %v3093_v1 = vld [vmem:[#allocation5 + $0xe0] sm:$0xf]  ;;  %v4297_v2 = vld [vmem:[#allocation5 + $0xec] sm:$0xf0] }
  0x19   :  { %v3221_v3 = vld [vmem:[#allocation5 + $0x1e0] sm:$0xf]  ;;  %v3094_v4 = vor.u32 %v4297_v2, %v3093_v1  ;;  %v4329_v5 = vld [vmem:[#allocation5 + $0x1ec] sm:$0xf0] }
  0x1a   :  { %v3349_v6 = vld [vmem:[#allocation5 + $0x2e0] sm:$0xf]  ;;  %v4361_v7 = vld [vmem:[#allocation5 + $0x2ec] sm:$0xf0]  ;;  %v3222_v8 = vor.u32 %v4329_v5, %v3221_v3 }
  0x1b   :  { %v3350_v9 = vor.u32 %v4361_v7, %v3349_v6  ;;  %v3477_v10 = vld [vmem:[#allocation5 + $0x3e0] sm:$0xf]  ;;  %v4393_v11 = vld [vmem:[#allocation5 + $0x3ec] sm:$0xf0]  ;;  %1286 = vmatpush.bf16.msra.mxu0 %v3094_v4 }
  0x1c   :  { %v3077_v12 = vld [vmem:[#allocation5 + $0xc0] sm:$0xf]  ;;  %v3478_v13 = vor.u32 %v4393_v11, %v3477_v10  ;;  %v4293_v14 = vld [vmem:[#allocation5 + $0xcc] sm:$0xf0]  ;;  %1299 = vmatpush.bf16.msra.mxu1 %v3222_v8 }
  0x1d   :  { %v3205_v15 = vld [vmem:[#allocation5 + $0x1c0] sm:$0xf]  ;;  %v4325_v16 = vld [vmem:[#allocation5 + $0x1cc] sm:$0xf0]  ;;  %1312 = vmatpush.bf16.msra.mxu2 %v3350_v9  ;;  %v3078_v17 = vor.u32 %v4293_v14, %v3077_v12 }
  0x1e   :  { %v3206_v18 = vor.u32 %v4325_v16, %v3205_v15  ;;  %v3333_v19 = vld [vmem:[#allocation5 + $0x2c0] sm:$0xf]  ;;  %v4357_v20 = vld [vmem:[#allocation5 + $0x2cc] sm:$0xf0]  ;;  %1325 = vmatpush.bf16.msra.mxu3 %v3478_v13 }
  0x1f   :  { %v3461_v21 = vld [vmem:[#allocation5 + $0x3c0] sm:$0xf]  ;;  %v3334_v22 = vor.u32 %v4357_v20, %v3333_v19  ;;  %v4389_v23 = vld [vmem:[#allocation5 + $0x3cc] sm:$0xf0]  ;;  %1287 = vmatpush.bf16.msra.mxu0 %v3078_v17 }
  0x20   :  { %v3061_v24 = vld [vmem:[#allocation5 + $0xa0] sm:$0xf]  ;;  %v4289_v25 = vld [vmem:[#allocation5 + $0xac] sm:$0xf0]  ;;  %v3462_v26 = vor.u32 %v4389_v23, %v3461_v21  ;;  %1300 = vmatpush.bf16.msra.mxu1 %v3206_v18 }
  0x21   :  { %v3189_v27 = vld [vmem:[#allocation5 + $0x1a0] sm:$0xf]  ;;  %v4321_v28 = vld [vmem:[#allocation5 + $0x1ac] sm:$0xf0]  ;;  %v3062_v30 = vor.u32 %v4289_v25, %v3061_v24  ;;  %1313 = vmatpush.bf16.msra.mxu2 %v3334_v22 }
  0x22   :  { %v3317_v29 = vld [vmem:[#allocation5 + $0x2a0] sm:$0xf]  ;;  %v4353_v31 = vld [vmem:[#allocation5 + $0x2ac] sm:$0xf0]  ;;  %v3190_v34 = vor.u32 %v4321_v28, %v3189_v27  ;;  %1326 = vmatpush.bf16.msra.mxu3 %v3462_v26 }
  0x23   :  { %v3445_v32 = vld [vmem:[#allocation5 + $0x3a0] sm:$0xf]  ;;  %v4385_v33 = vld [vmem:[#allocation5 + $0x3ac] sm:$0xf0]  ;;  %v3318_v35 = vor.u32 %v4353_v31, %v3317_v29  ;;  %1288 = vmatpush.bf16.msra.mxu0 %v3062_v30 }
  0x24   :  { %v3045_v36 = vld [vmem:[#allocation5 + $0x80] sm:$0xf]  ;;  %v4285_v37 = vld [vmem:[#allocation5 + $0x8c] sm:$0xf0]  ;;  %v3446_v39 = vor.u32 %v4385_v33, %v3445_v32  ;;  %1301 = vmatpush.bf16.msra.mxu1 %v3190_v34  ;;  %v4295_v34 = vld [vmem:[#allocation5 + $0xe4] sm:$0xf] }
  0x25   :  { %v3173_v38 = vld [vmem:[#allocation5 + $0x180] sm:$0xf]  ;;  %v4317_v40 = vld [vmem:[#allocation5 + $0x18c] sm:$0xf0]  ;;  %v3046_v45 = vor.u32 %v4285_v37, %v3045_v36  ;;  %1314 = vmatpush.bf16.msra.mxu2 %v3318_v35  ;;  %v3095_v35 = vld [vmem:[#allocation5 + $0xf0] sm:$0xf0] }
  0x26   :  { %v3301_v41 = vld [vmem:[#allocation5 + $0x280] sm:$0xf]  ;;  %v4349_v42 = vld [vmem:[#allocation5 + $0x28c] sm:$0xf0]  ;;  %v3174_v46 = vor.u32 %v4317_v40, %v3173_v38  ;;  %1327 = vmatpush.bf16.msra.mxu3 %v3446_v39  ;;  %v4327_v38 = vld [vmem:[#allocation5 + $0x1e4] sm:$0xf] }
  0x27   :  { %v3429_v43 = vld [vmem:[#allocation5 + $0x380] sm:$0xf]  ;;  %v4381_v44 = vld [vmem:[#allocation5 + $0x38c] sm:$0xf0]  ;;  %v3302_v47 = vor.u32 %v4349_v42, %v3301_v41  ;;  %1289 = vmatpush.bf16.msra.mxu0 %v3046_v45  ;;  %v3223_v39 = vld [vmem:[#allocation5 + $0x1f0] sm:$0xf0] }
  0x28   :  { %v3029_v48 = vld [vmem:[#allocation5 + $0x60] sm:$0xf]  ;;  %v4281_v49 = vld [vmem:[#allocation5 + $0x6c] sm:$0xf0]  ;;  %v3430_v51 = vor.u32 %v4381_v44, %v3429_v43  ;;  %1302 = vmatpush.bf16.msra.mxu1 %v3174_v46  ;;  %v3098_v43 = vor.u32 %v4295_v34, %v3095_v35  ;;  %v3159_v34 = vld [vmem:[#allocation5 + $0x170] sm:$0xf0] }
  0x29   :  { %v3157_v50 = vld [vmem:[#allocation5 + $0x160] sm:$0xf]  ;;  %v4313_v52 = vld [vmem:[#allocation5 + $0x16c] sm:$0xf0]  ;;  %v3030_v57 = vor.u32 %v4281_v49, %v3029_v48  ;;  %1315 = vmatpush.bf16.msra.mxu2 %v3302_v47  ;;  %v3226_v47 = vor.u32 %v4327_v38, %v3223_v39  ;;  %v4291_v49 = vld [vmem:[#allocation5 + $0xc4] sm:$0xf] }
  0x2a   :  { %v3285_v53 = vld [vmem:[#allocation5 + $0x260] sm:$0xf]  ;;  %v4345_v54 = vld [vmem:[#allocation5 + $0x26c] sm:$0xf0]  ;;  %v3158_v58 = vor.u32 %v4313_v52, %v3157_v50  ;;  %1328 = vmatpush.bf16.msra.mxu3 %v3430_v51  ;;  %v3079_v50 = vld [vmem:[#allocation5 + $0xd0] sm:$0xf0] }
  0x2b   :  { %v3413_v55 = vld [vmem:[#allocation5 + $0x360] sm:$0xf]  ;;  %v4377_v56 = vld [vmem:[#allocation5 + $0x36c] sm:$0xf0]  ;;  %v3286_v59 = vor.u32 %v4345_v54, %v3285_v53  ;;  %1290 = vmatpush.bf16.msra.mxu0 %v3030_v57  ;;  %v4323_v51 = vld [vmem:[#allocation5 + $0x1c4] sm:$0xf] }
  0x2c   :  { %v3013_v60 = vld [vmem:[#allocation5 + $0x40] sm:$0xf]  ;;  %v4277_v61 = vld [vmem:[#allocation5 + $0x4c] sm:$0xf0]  ;;  %v3414_v63 = vor.u32 %v4377_v56, %v3413_v55  ;;  %1303 = vmatpush.bf16.msra.mxu1 %v3158_v58  ;;  %v3207_v52 = vld [vmem:[#allocation5 + $0x1d0] sm:$0xf0]  ;;  %v3082_v58 = vor.u32 %v4291_v49, %v3079_v50 }
  0x2d   :  { %v3141_v62 = vld [vmem:[#allocation5 + $0x140] sm:$0xf]  ;;  %v4309_v0 = vld [vmem:[#allocation5 + $0x14c] sm:$0xf0]  ;;  %v3014_v5 = vor.u32 %v4277_v61, %v3013_v60  ;;  %1316 = vmatpush.bf16.msra.mxu2 %v3286_v59  ;;  %v100_v53 = vld [vmem:[#allocation3] sm:$0xff] }
  0x2e   :  { %v3269_v1 = vld [vmem:[#allocation5 + $0x240] sm:$0xf]  ;;  %v4341_v2 = vld [vmem:[#allocation5 + $0x24c] sm:$0xf0]  ;;  %v3142_v6 = vor.u32 %v4309_v0, %v3141_v62  ;;  %1329 = vmatpush.bf16.msra.mxu3 %v3414_v63  ;;  %v308_v55 = vunpack.c.l.b16 %v100_v53  ;;  %v309_v56 = vunpack.c.h.b16 %v100_v53  ;;  %v3210_v62 = vor.u32 %v4323_v51, %v3207_v52  ;;  %v4287_v0 = vld [vmem:[#allocation5 + $0xa4] sm:$0xf] }
  0x2f   :  { %v3397_v3 = vld [vmem:[#allocation5 + $0x340] sm:$0xf]  ;;  %v4373_v4 = vld [vmem:[#allocation5 + $0x34c] sm:$0xf0]  ;;  %v3270_v7 = vor.u32 %v4341_v2, %v3269_v1  ;;  %1291 = vmatpush.bf16.msra.mxu0 %v3014_v5  ;;  %v3063_v1 = vld [vmem:[#allocation5 + $0xb0] sm:$0xf0] }
  0x30   :  { %v2997_v8 = vld [vmem:[#allocation5 + $0x20] sm:$0xf]  ;;  %v4273_v9 = vld [vmem:[#allocation5 + $0x2c] sm:$0xf0]  ;;  %v3398_v11 = vor.u32 %v4373_v4, %v3397_v3  ;;  %1304 = vmatpush.bf16.msra.mxu1 %v3142_v6  ;;  %v4804_v2 = vpack.c.b16 %v308_v55, %v308_v55  ;;  %v4806_v3 = vpack.c.b16 %v309_v56, %v309_v56  ;;  %v4319_v4 = vld [vmem:[#allocation5 + $0x1a4] sm:$0xf] }
  0x31   :  { %v3125_v10 = vld [vmem:[#allocation5 + $0x120] sm:$0xf]  ;;  %v4305_v12 = vld [vmem:[#allocation5 + $0x12c] sm:$0xf0]  ;;  %v2998_v17 = vor.u32 %v4273_v9, %v2997_v8  ;;  %1317 = vmatpush.bf16.msra.mxu2 %v3270_v7  ;;  %v3191_v5 = vld [vmem:[#allocation5 + $0x1b0] sm:$0xf0]  ;;  %v3066_v9 = vor.u32 %v4287_v0, %v3063_v1 }
  0x32   :  { %v3253_v13 = vld [vmem:[#allocation5 + $0x220] sm:$0xf]  ;;  %v4337_v14 = vld [vmem:[#allocation5 + $0x22c] sm:$0xf0]  ;;  %v3126_v20 = vor.u32 %v4305_v12, %v3125_v10  ;;  %1330 = vmatpush.bf16.msra.mxu3 %v3398_v11  ;;  %v4271_v55 = vld [vmem:[#allocation5 + $0x24] sm:$0xf] }
  0x33   :  { %v3381_v15 = vld [vmem:[#allocation5 + $0x320] sm:$0xf]  ;;  %v4369_v16 = vld [vmem:[#allocation5 + $0x32c] sm:$0xf0]  ;;  %v3254_v21 = vor.u32 %v4337_v14, %v3253_v13  ;;  %1292 = vmatpush.bf16.msra.mxu0 %v2998_v17  ;;  %v4283_v17 = vld [vmem:[#allocation5 + $0x84] sm:$0xf] }
  0x34   :  { %v2981_v18 = vld [vmem:[#allocation5] sm:$0xf]  ;;  %v4269_v19 = vld [vmem:[#allocation5 + $0xc] sm:$0xf0]  ;;  %v3382_v25 = vor.u32 %v4369_v16, %v3381_v15  ;;  %1305 = vmatpush.bf16.msra.mxu1 %v3126_v20  ;;  %v3194_v15 = vor.u32 %v4319_v4, %v3191_v5  ;;  %v3175_v20 = vld [vmem:[#allocation5 + $0x190] sm:$0xf0] }
  0x35   :  { %v3109_v22 = vld [vmem:[#allocation5 + $0x100] sm:$0xf]  ;;  %v4301_v23 = vld [vmem:[#allocation5 + $0x10c] sm:$0xf0]  ;;  %v2982_v32 = vor.u32 %v4269_v19, %v2981_v18  ;;  %1318 = vmatpush.bf16.msra.mxu2 %v3254_v21  ;;  %v3047_v18 = vld [vmem:[#allocation5 + $0x90] sm:$0xf0] }
  0x36   :  { %v3237_v24 = vld [vmem:[#allocation5 + $0x200] sm:$0xf]  ;;  %v4333_v26 = vld [vmem:[#allocation5 + $0x20c] sm:$0xf0]  ;;  %v3110_v36 = vor.u32 %v4301_v23, %v3109_v22  ;;  %1331 = vmatpush.bf16.msra.mxu3 %v3382_v25  ;;  %v4315_v19 = vld [vmem:[#allocation5 + $0x184] sm:$0xf]  ;;  %v3050_v25 = vor.u32 %v4283_v17, %v3047_v18 }
  0x37   :  { %v3365_v27 = vld [vmem:[#allocation5 + $0x300] sm:$0xf]  ;;  %v4365_v28 = vld [vmem:[#allocation5 + $0x30c] sm:$0xf0]  ;;  %v3238_v37 = vor.u32 %v4333_v26, %v3237_v24  ;;  %1293 = vmatpush.bf16.msra.mxu0 %v2982_v32  ;;  %v3031_v32 = vld [vmem:[#allocation5 + $0x70] sm:$0xf0] }
  0x38   :  { %v3605_v29 = vld [vmem:[#allocation5 + $0x4e0] sm:$0xf]  ;;  %v4425_v30 = vld [vmem:[#allocation5 + $0x4ec] sm:$0xf0]  ;;  %v3366_v40 = vor.u32 %v4365_v28, %v3365_v27  ;;  %1306 = vmatpush.bf16.msra.mxu1 %v3110_v36  ;;  %v2999_v56 = vld [vmem:[#allocation5 + $0x30] sm:$0xf0] }
  0x39   :  { %v3733_v31 = vld [vmem:[#allocation5 + $0x5e0] sm:$0xf]  ;;  %v4457_v33 = vld [vmem:[#allocation5 + $0x5ec] sm:$0xf0]  ;;  %v3606_v41 = vor.u32 %v4425_v30, %v3605_v29  ;;  %1319 = vmatpush.bf16.msra.mxu2 %v3238_v37  ;;  %v3178_v29 = vor.u32 %v4315_v19, %v3175_v20  ;;  %v3002_v0 = vor.u32 %v4271_v55, %v2999_v56  ;;  %v4267_v4 = vld [vmem:[#allocation5 + $0x4] sm:$0xf] }
  0x3a   :  { %v3734_v42 = vor.u32 %v4457_v33, %v3733_v31  ;;  %v3589_v44 = vld [vmem:[#allocation5 + $0x4c0] sm:$0xf]  ;;  %v4421_v45 = vld [vmem:[#allocation5 + $0x4cc] sm:$0xf0]  ;;  %1332 = vmatpush.bf16.msra.mxu3 %v3366_v40  ;;  %1294 = vmatmul.bf16.vlgmr.msra.gmra.mxu0 %v4804_v2  ;;  %v4279_v31 = vld [vmem:[#allocation5 + $0x64] sm:$0xf] }
  0x3b   :  { %v3717_v46 = vld [vmem:[#allocation5 + $0x5c0] sm:$0xf]  ;;  %v4453_v48 = vld [vmem:[#allocation5 + $0x5cc] sm:$0xf0]  ;;  %1338 = vmatpush.bf16.msrb.mxu0 %v3606_v41  ;;  %v3590_v54 = vor.u32 %v4421_v45, %v3589_v44  ;;  %1307 = vmatmul.bf16.vlgmr.msra.gmra.mxu1 %v4806_v3  ;;  %v4311_v33 = vld [vmem:[#allocation5 + $0x164] sm:$0xf]  ;;  %v3034_v37 = vor.u32 %v4279_v31, %v3031_v32 }
  0x3c   :  { %1351 = vmatpush.bf16.msrb.mxu1 %v3734_v42  ;;  %v3718_v57 = vor.u32 %v4453_v48, %v3717_v46  ;;  %v3573_v59 = vld [vmem:[#allocation5 + $0x4a0] sm:$0xf]  ;;  %v4417_v60 = vld [vmem:[#allocation5 + $0x4ac] sm:$0xf0]  ;;  %v3162_v41 = vor.u32 %v4311_v33, %v3159_v34  ;;  %v3015_v44 = vld [vmem:[#allocation5 + $0x50] sm:$0xf0] }
  0x3d   :  { %1364 = vmatpush.bf16.msrb.mxu2 %v3098_v43  ;;  %v3701_v61 = vld [vmem:[#allocation5 + $0x5a0] sm:$0xf]  ;;  %v4449_v63 = vld [vmem:[#allocation5 + $0x5ac] sm:$0xf0]  ;;  %v3574_v6 = vor.u32 %v4417_v60, %v3573_v59  ;;  %v4275_v43 = vld [vmem:[#allocation5 + $0x44] sm:$0xf] }
  0x3e   :  { %1377 = vmatpush.bf16.msrb.mxu3 %v3226_v47  ;;  %v101_v7 = vld [vmem:[#allocation3 + $0x8] sm:$0xff]  ;;  %v3702_v8 = vor.u32 %v4449_v63, %v3701_v61  ;;  %v3557_v10 = vld [vmem:[#allocation5 + $0x480] sm:$0xf]  ;;  %v4307_v45 = vld [vmem:[#allocation5 + $0x144] sm:$0xf]  ;;  %v3018_v49 = vor.u32 %v4275_v43, %v3015_v44 }
  0x3f   :  { %1339 = vmatpush.bf16.msrb.mxu0 %v3590_v54  ;;  %v4413_v11 = vld [vmem:[#allocation5 + $0x48c] sm:$0xf0]  ;;  %v3685_v12 = vld [vmem:[#allocation5 + $0x580] sm:$0xf]  ;;  %v310_v13 = vunpack.c.l.b16 %v101_v7  ;;  %v311_v14 = vunpack.c.h.b16 %v101_v7  ;;  %v3143_v46 = vld [vmem:[#allocation5 + $0x150] sm:$0xf0] }
  0x40   :  { %1352 = vmatpush.bf16.msrb.mxu1 %v3718_v57  ;;  %v4445_v16 = vld [vmem:[#allocation5 + $0x58c] sm:$0xf0]  ;;  %v3558_v23 = vor.u32 %v4413_v11, %v3557_v10  ;;  %v3541_v26 = vld [vmem:[#allocation5 + $0x460] sm:$0xf]  ;;  %v3146_v53 = vor.u32 %v4307_v45, %v3143_v46  ;;  %v4303_v57 = vld [vmem:[#allocation5 + $0x124] sm:$0xf] }
  0x41   :  { %1365 = vmatpush.bf16.msrb.mxu2 %v3082_v58  ;;  %v4810_v21 = vpack.c.b16 %v310_v13, %v310_v13  ;;  %v4812_v22 = vpack.c.b16 %v311_v14, %v311_v14  ;;  %v3686_v24 = vor.u32 %v4445_v16, %v3685_v12  ;;  %v4409_v27 = vld [vmem:[#allocation5 + $0x46c] sm:$0xf0]  ;;  %v3669_v28 = vld [vmem:[#allocation5 + $0x560] sm:$0xf]  ;;  %v3127_v58 = vld [vmem:[#allocation5 + $0x130] sm:$0xf0] }
  0x42   :  { %1378 = vmatpush.bf16.msrb.mxu3 %v3210_v62  ;;  %v4441_v30 = vld [vmem:[#allocation5 + $0x56c] sm:$0xf0]  ;;  %v3542_v35 = vor.u32 %v4409_v27, %v3541_v26  ;;  %v3525_v38 = vld [vmem:[#allocation5 + $0x440] sm:$0xf]  ;;  %v102_v5 = vld [vmem:[#allocation3 + $0x10] sm:$0xff] }
  0x43   :  { %1340 = vmatpush.bf16.msrb.mxu0 %v3574_v6  ;;  %1320 = vmatmul.bf16.vlgmr.msra.gmra.mxu2 %v4810_v21  ;;  %v3670_v36 = vor.u32 %v4441_v30, %v3669_v28  ;;  %v4405_v39 = vld [vmem:[#allocation5 + $0x44c] sm:$0xf0]  ;;  %v3653_v40 = vld [vmem:[#allocation5 + $0x540] sm:$0xf]  ;;  %v3130_v6 = vor.u32 %v4303_v57, %v3127_v58  ;;  %v2983_v7 = vld [vmem:[#allocation5 + $0x10] sm:$0xf0]  ;;  %v312_v17 = vunpack.c.l.b16 %v102_v5 }
  0x44   :  { %1353 = vmatpush.bf16.msrb.mxu1 %v3702_v8  ;;  %1333 = vmatmul.bf16.vlgmr.msra.gmra.mxu3 %v4812_v22  ;;  %v4437_v42 = vld [vmem:[#allocation5 + $0x54c] sm:$0xf0]  ;;  %v3526_v47 = vor.u32 %v4405_v39, %v3525_v38  ;;  %v3509_v50 = vld [vmem:[#allocation5 + $0x420] sm:$0xf]  ;;  %v4299_v8 = vld [vmem:[#allocation5 + $0x104] sm:$0xf]  ;;  %v2986_v19 = vor.u32 %v4267_v4, %v2983_v7 }
  0x45   :  { %1366 = vmatpush.bf16.msrb.mxu2 %v3066_v9  ;;  %v3654_v48 = vor.u32 %v4437_v42, %v3653_v40  ;;  %v4401_v51 = vld [vmem:[#allocation5 + $0x42c] sm:$0xf0]  ;;  %v3637_v52 = vld [vmem:[#allocation5 + $0x520] sm:$0xf]  ;;  %v3111_v9 = vld [vmem:[#allocation5 + $0x110] sm:$0xf0]  ;;  %v4816_v33 = vpack.c.b16 %v312_v17, %v312_v17 }
  0x46   :  { %1379 = vmatpush.bf16.msrb.mxu3 %v3194_v15  ;;  %v4433_v54 = vld [vmem:[#allocation5 + $0x52c] sm:$0xf0]  ;;  %v3510_v59 = vor.u32 %v4401_v51, %v3509_v50  ;;  %v3493_v60 = vld [vmem:[#allocation5 + $0x400] sm:$0xf]  ;;  %v4359_v10 = vld [vmem:[#allocation5 + $0x2e4] sm:$0xf] }
  0x47   :  { %1341 = vmatpush.bf16.msrb.mxu0 %v3558_v23  ;;  %v4397_v61 = vld [vmem:[#allocation5 + $0x40c] sm:$0xf0]  ;;  %v3621_v62 = vld [vmem:[#allocation5 + $0x500] sm:$0xf]  ;;  %v3638_v63 = vor.u32 %v4433_v54, %v3637_v52  ;;  %v3351_v11 = vld [vmem:[#allocation5 + $0x2f0] sm:$0xf0] }
  0x48   :  { %1354 = vmatpush.bf16.msrb.mxu1 %v3686_v24  ;;  %v4429_v1 = vld [vmem:[#allocation5 + $0x50c] sm:$0xf0]  ;;  %v4391_v12 = vld [vmem:[#allocation5 + $0x3e4] sm:$0xf]  ;;  %v3494_v13 = vor.u32 %v4397_v61, %v3493_v60  ;;  %v3479_v14 = vld [vmem:[#allocation5 + $0x3f0] sm:$0xf0]  ;;  %v313_v24 = vunpack.c.h.b16 %v102_v5  ;;  %v3354_v26 = vor.u32 %v4359_v10, %v3351_v11 }
  0x49   :  { %1367 = vmatpush.bf16.msrb.mxu2 %v3050_v25  ;;  %v4423_v15 = vld [vmem:[#allocation5 + $0x4e4] sm:$0xf]  ;;  %v3607_v16 = vld [vmem:[#allocation5 + $0x4f0] sm:$0xf0]  ;;  %v3622_v18 = vor.u32 %v4429_v1, %v3621_v62  ;;  %v3114_v25 = vor.u32 %v4299_v8, %v3111_v9  ;;  %v3482_v27 = vor.u32 %v4391_v12, %v3479_v14 }
  0x4a   :  { %1380 = vmatpush.bf16.msrb.mxu3 %v3178_v29  ;;  %v4455_v20 = vld [vmem:[#allocation5 + $0x5e4] sm:$0xf]  ;;  %v3735_v23 = vld [vmem:[#allocation5 + $0x5f0] sm:$0xf0]  ;;  %v3610_v28 = vor.u32 %v4423_v15, %v3607_v16 }
  0x4b   :  { %1342 = vmatpush.bf16.msrb.mxu0 %v3542_v35  ;;  %v4355_v29 = vld [vmem:[#allocation5 + $0x2c4] sm:$0xf]  ;;  %v3335_v30 = vld [vmem:[#allocation5 + $0x2d0] sm:$0xf0]  ;;  %v3738_v32 = vor.u32 %v4455_v20, %v3735_v23 }
  0x4c   :  { %1355 = vmatpush.bf16.msrb.mxu1 %v3670_v36  ;;  %v4387_v31 = vld [vmem:[#allocation5 + $0x3c4] sm:$0xf]  ;;  %v3463_v34 = vld [vmem:[#allocation5 + $0x3d0] sm:$0xf0]  ;;  %v3338_v40 = vor.u32 %v4355_v29, %v3335_v30 }
  0x4d   :  { %1368 = vmatpush.bf16.msrb.mxu2 %v3034_v37  ;;  %v4419_v35 = vld [vmem:[#allocation5 + $0x4c4] sm:$0xf]  ;;  %v3591_v36 = vld [vmem:[#allocation5 + $0x4d0] sm:$0xf0]  ;;  %v4818_v37 = vpack.c.b16 %v313_v24, %v313_v24 }
  0x4e   :  { %1381 = vmatpush.bf16.msrb.mxu3 %v3162_v41  ;;  %v4451_v38 = vld [vmem:[#allocation5 + $0x5c4] sm:$0xf]  ;;  %v3719_v39 = vld [vmem:[#allocation5 + $0x5d0] sm:$0xf0]  ;;  %v3466_v41 = vor.u32 %v4387_v31, %v3463_v34  ;;  %v3594_v42 = vor.u32 %v4419_v35, %v3591_v36 }
  0x4f   :  { %1343 = vmatpush.bf16.msrb.mxu0 %v3526_v47  ;;  %v4351_v43 = vld [vmem:[#allocation5 + $0x2a4] sm:$0xf]  ;;  %v3319_v44 = vld [vmem:[#allocation5 + $0x2b0] sm:$0xf0]  ;;  %v3722_v46 = vor.u32 %v4451_v38, %v3719_v39 }
  0x50   :  { %1356 = vmatpush.bf16.msrb.mxu1 %v3654_v48  ;;  %v4383_v45 = vld [vmem:[#allocation5 + $0x3a4] sm:$0xf]  ;;  %v3447_v47 = vld [vmem:[#allocation5 + $0x3b0] sm:$0xf0]  ;;  %v3322_v52 = vor.u32 %v4351_v43, %v3319_v44 }
  0x51   :  { %1369 = vmatpush.bf16.msrb.mxu2 %v3018_v49  ;;  %v4415_v48 = vld [vmem:[#allocation5 + $0x4a4] sm:$0xf]  ;;  %v3575_v49 = vld [vmem:[#allocation5 + $0x4b0] sm:$0xf0] }
  0x52   :  { %1382 = vmatpush.bf16.msrb.mxu3 %v3146_v53  ;;  %v4447_v50 = vld [vmem:[#allocation5 + $0x5a4] sm:$0xf]  ;;  %v3703_v51 = vld [vmem:[#allocation5 + $0x5b0] sm:$0xf0]  ;;  %v3450_v53 = vor.u32 %v4383_v45, %v3447_v47  ;;  %v3578_v54 = vor.u32 %v4415_v48, %v3575_v49 }
  0x53   :  { %1344 = vmatpush.bf16.msrb.mxu0 %v3510_v59  ;;  %v4347_v55 = vld [vmem:[#allocation5 + $0x284] sm:$0xf]  ;;  %v3303_v56 = vld [vmem:[#allocation5 + $0x290] sm:$0xf0]  ;;  %v3706_v58 = vor.u32 %v4447_v50, %v3703_v51 }
  0x54   :  { %1357 = vmatpush.bf16.msrb.mxu1 %v3638_v63  ;;  %v4379_v57 = vld [vmem:[#allocation5 + $0x384] sm:$0xf]  ;;  %v3431_v59 = vld [vmem:[#allocation5 + $0x390] sm:$0xf0] }
  0x55   :  { %1370 = vmatpush.bf16.msrb.mxu2 %v3002_v0  ;;  %v4411_v60 = vld [vmem:[#allocation5 + $0x484] sm:$0xf]  ;;  %v3559_v61 = vld [vmem:[#allocation5 + $0x490] sm:$0xf0]  ;;  %v3306_v0 = vor.u32 %v4347_v55, %v3303_v56  ;;  %v3434_v1 = vor.u32 %v4379_v57, %v3431_v59  ;;  %v4298_v55 = vld [vmem:[#allocation5 + $0xf4] sm:$0xf0] }
  0x56   :  { %1383 = vmatpush.bf16.msrb.mxu3 %v3130_v6  ;;  %v4443_v62 = vld [vmem:[#allocation5 + $0x584] sm:$0xf]  ;;  %v3687_v63 = vld [vmem:[#allocation5 + $0x590] sm:$0xf0]  ;;  %v3562_v4 = vor.u32 %v4411_v60, %v3559_v61  ;;  %v3229_v56 = vld [vmem:[#allocation5 + $0x1e8] sm:$0xf] }
  0x57   :  { %1345 = vmatpush.bf16.msrb.mxu0 %v3494_v13  ;;  %v4343_v5 = vld [vmem:[#allocation5 + $0x264] sm:$0xf]  ;;  %v3287_v6 = vld [vmem:[#allocation5 + $0x270] sm:$0xf0]  ;;  %v3690_v8 = vor.u32 %v4443_v62, %v3687_v63  ;;  %v3357_v59 = vld [vmem:[#allocation5 + $0x2e8] sm:$0xf] }
  0x58   :  { %1358 = vmatpush.bf16.msrb.mxu1 %v3622_v18  ;;  %v4375_v7 = vld [vmem:[#allocation5 + $0x364] sm:$0xf]  ;;  %v3415_v9 = vld [vmem:[#allocation5 + $0x370] sm:$0xf0]  ;;  %v3290_v14 = vor.u32 %v4343_v5, %v3287_v6  ;;  %v4362_v60 = vld [vmem:[#allocation5 + $0x2f4] sm:$0xf0] }
  0x59   :  { %1371 = vmatpush.bf16.msrb.mxu2 %v2986_v19  ;;  %v4407_v10 = vld [vmem:[#allocation5 + $0x464] sm:$0xf]  ;;  %v3543_v11 = vld [vmem:[#allocation5 + $0x470] sm:$0xf0]  ;;  %v3418_v15 = vor.u32 %v4375_v7, %v3415_v9  ;;  %v3485_v63 = vld [vmem:[#allocation5 + $0x3e8] sm:$0xf]  ;;  %v3358_v6 = vor.u32 %v4362_v60, %v3357_v59 }
  0x5a   :  { %1384 = vmatpush.bf16.msrb.mxu3 %v3114_v25  ;;  %1346 = vmatmul.bf16.vlgmr.msrb.gmra.mxu0 %v4816_v33  ;;  %v4439_v12 = vld [vmem:[#allocation5 + $0x564] sm:$0xf]  ;;  %v3671_v13 = vld [vmem:[#allocation5 + $0x570] sm:$0xf0]  ;;  %v3546_v16 = vor.u32 %v4407_v10, %v3543_v11  ;;  %v3085_v7 = vld [vmem:[#allocation5 + $0xc8] sm:$0xf] }
  0x5b   :  { %1390 = vmatpush.bf16.msra.mxu0 %v3354_v26  ;;  %1359 = vmatmul.bf16.vlgmr.msrb.gmra.mxu1 %v4818_v37  ;;  %v4339_v17 = vld [vmem:[#allocation5 + $0x244] sm:$0xf]  ;;  %v3271_v18 = vld [vmem:[#allocation5 + $0x250] sm:$0xf0]  ;;  %v3674_v20 = vor.u32 %v4439_v12, %v3671_v13  ;;  %v3213_v9 = vld [vmem:[#allocation5 + $0x1c8] sm:$0xf] }
  0x5c   :  { %1403 = vmatpush.bf16.msra.mxu1 %v3482_v27  ;;  %1372 = vmatmul.bf16.vlgmr.msrb.gmra.mxu2 %v4804_v2  ;;  %v4371_v19 = vld [vmem:[#allocation5 + $0x344] sm:$0xf]  ;;  %v3399_v23 = vld [vmem:[#allocation5 + $0x350] sm:$0xf0]  ;;  %v4326_v11 = vld [vmem:[#allocation5 + $0x1d4] sm:$0xf0] }
  0x5d   :  { %1416 = vmatpush.bf16.msra.mxu2 %v3610_v28  ;;  %1385 = vmatmul.bf16.vlgmr.msrb.gmra.mxu3 %v4806_v3  ;;  %v4403_v24 = vld [vmem:[#allocation5 + $0x444] sm:$0xf]  ;;  %v3527_v25 = vld [vmem:[#allocation5 + $0x450] sm:$0xf0]  ;;  %v3274_v28 = vor.u32 %v4339_v17, %v3271_v18  ;;  %v3402_v29 = vor.u32 %v4371_v19, %v3399_v23  ;;  %v3341_v12 = vld [vmem:[#allocation5 + $0x2c8] sm:$0xf]  ;;  %v3214_v17 = vor.u32 %v4326_v11, %v3213_v9 }
  0x5e   :  { %1429 = vmatpush.bf16.msra.mxu3 %v3738_v32  ;;  %v4435_v26 = vld [vmem:[#allocation5 + $0x544] sm:$0xf]  ;;  %v3655_v27 = vld [vmem:[#allocation5 + $0x550] sm:$0xf0]  ;;  %v3530_v30 = vor.u32 %v4403_v24, %v3527_v25  ;;  %v4358_v13 = vld [vmem:[#allocation5 + $0x2d4] sm:$0xf0] }
  0x5f   :  { %1391 = vmatpush.bf16.msra.mxu0 %v3338_v40  ;;  %v4335_v31 = vld [vmem:[#allocation5 + $0x224] sm:$0xf]  ;;  %v3255_v32 = vld [vmem:[#allocation5 + $0x230] sm:$0xf0]  ;;  %v3658_v35 = vor.u32 %v4435_v26, %v3655_v27  ;;  %v3342_v18 = vor.u32 %v4358_v13, %v3341_v12  ;;  %v3069_v19 = vld [vmem:[#allocation5 + $0xa8] sm:$0xf] }
  0x60   :  { %1404 = vmatpush.bf16.msra.mxu1 %v3466_v41  ;;  %v4367_v34 = vld [vmem:[#allocation5 + $0x324] sm:$0xf]  ;;  %v3383_v36 = vld [vmem:[#allocation5 + $0x330] sm:$0xf0]  ;;  %v3197_v23 = vld [vmem:[#allocation5 + $0x1a8] sm:$0xf] }
  0x61   :  { %1417 = vmatpush.bf16.msra.mxu2 %v3594_v42  ;;  %v4399_v38 = vld [vmem:[#allocation5 + $0x424] sm:$0xf]  ;;  %v3511_v39 = vld [vmem:[#allocation5 + $0x430] sm:$0xf0]  ;;  %v3258_v42 = vor.u32 %v4335_v31, %v3255_v32  ;;  %v3386_v45 = vor.u32 %v4367_v34, %v3383_v36  ;;  %v4322_v25 = vld [vmem:[#allocation5 + $0x1b4] sm:$0xf0] }
  0x62   :  { %1430 = vmatpush.bf16.msra.mxu3 %v3722_v46  ;;  %v4431_v40 = vld [vmem:[#allocation5 + $0x524] sm:$0xf]  ;;  %v3639_v41 = vld [vmem:[#allocation5 + $0x530] sm:$0xf0]  ;;  %v3514_v46 = vor.u32 %v4399_v38, %v3511_v39  ;;  %v3325_v26 = vld [vmem:[#allocation5 + $0x2a8] sm:$0xf]  ;;  %v3198_v31 = vor.u32 %v4322_v25, %v3197_v23 }
  0x63   :  { %1392 = vmatpush.bf16.msra.mxu0 %v3322_v52  ;;  %v4331_v43 = vld [vmem:[#allocation5 + $0x204] sm:$0xf]  ;;  %v3239_v44 = vld [vmem:[#allocation5 + $0x210] sm:$0xf0]  ;;  %v3642_v50 = vor.u32 %v4431_v40, %v3639_v41  ;;  %v4354_v27 = vld [vmem:[#allocation5 + $0x2b4] sm:$0xf0] }
  0x64   :  { %1405 = vmatpush.bf16.msra.mxu1 %v3450_v53  ;;  %v4363_v47 = vld [vmem:[#allocation5 + $0x304] sm:$0xf]  ;;  %v3367_v48 = vld [vmem:[#allocation5 + $0x310] sm:$0xf0]  ;;  %v3242_v57 = vor.u32 %v4331_v43, %v3239_v44  ;;  %v3326_v32 = vor.u32 %v4354_v27, %v3325_v26  ;;  %v3053_v34 = vld [vmem:[#allocation5 + $0x88] sm:$0xf] }
  0x65   :  { %1418 = vmatpush.bf16.msra.mxu2 %v3578_v54  ;;  %v4395_v49 = vld [vmem:[#allocation5 + $0x404] sm:$0xf]  ;;  %v3495_v51 = vld [vmem:[#allocation5 + $0x410] sm:$0xf0]  ;;  %v3101_v54 = vld [vmem:[#allocation5 + $0xe8] sm:$0xf]  ;;  %v3370_v61 = vor.u32 %v4363_v47, %v3367_v48 }
  0x66   :  { %1431 = vmatpush.bf16.msra.mxu3 %v3706_v58  ;;  %v4427_v52 = vld [vmem:[#allocation5 + $0x504] sm:$0xf]  ;;  %v3623_v53 = vld [vmem:[#allocation5 + $0x510] sm:$0xf0]  ;;  %v4330_v58 = vld [vmem:[#allocation5 + $0x1f4] sm:$0xf0]  ;;  %v3498_v62 = vor.u32 %v4395_v49, %v3495_v51 }
  0x67   :  { %1393 = vmatpush.bf16.msra.mxu0 %v3306_v0  ;;  %v4394_v0 = vld [vmem:[#allocation5 + $0x3f4] sm:$0xf0]  ;;  %v3230_v5 = vor.u32 %v4330_v58, %v3229_v56  ;;  %v3181_v36 = vld [vmem:[#allocation5 + $0x188] sm:$0xf] }
  0x68   :  { %1406 = vmatpush.bf16.msra.mxu1 %v3434_v1  ;;  %v3626_v1 = vor.u32 %v4427_v52, %v3623_v53  ;;  %v3486_v10 = vor.u32 %v4394_v0, %v3485_v63  ;;  %v4318_v39 = vld [vmem:[#allocation5 + $0x194] sm:$0xf0]  ;;  %v3309_v40 = vld [vmem:[#allocation5 + $0x288] sm:$0xf] }
  0x69   :  { %1419 = vmatpush.bf16.msra.mxu2 %v3562_v4  ;;  %v3102_v4 = vor.u32 %v4298_v55, %v3101_v54  ;;  %v4350_v41 = vld [vmem:[#allocation5 + $0x294] sm:$0xf0]  ;;  %v3037_v47 = vld [vmem:[#allocation5 + $0x68] sm:$0xf] }
  0x6a   :  { %1432 = vmatpush.bf16.msra.mxu3 %v3690_v8  ;;  %v4294_v8 = vld [vmem:[#allocation5 + $0xd4] sm:$0xf0]  ;;  %v3165_v49 = vld [vmem:[#allocation5 + $0x168] sm:$0xf] }
  0x6b   :  { %1394 = vmatpush.bf16.msra.mxu0 %v3290_v14  ;;  %v3469_v14 = vld [vmem:[#allocation5 + $0x3c8] sm:$0xf]  ;;  %v4382_v43 = vld [vmem:[#allocation5 + $0x394] sm:$0xf0] }
  0x6c   :  { %1407 = vmatpush.bf16.msra.mxu1 %v3418_v15  ;;  %v4390_v15 = vld [vmem:[#allocation5 + $0x3d4] sm:$0xf0]  ;;  %v3293_v52 = vld [vmem:[#allocation5 + $0x268] sm:$0xf] }
  0x6d   :  { %1420 = vmatpush.bf16.msra.mxu2 %v3546_v16  ;;  %v3086_v16 = vor.u32 %v4294_v8, %v3085_v7  ;;  %v3470_v24 = vor.u32 %v4390_v15, %v3469_v14  ;;  %v4282_v48 = vld [vmem:[#allocation5 + $0x74] sm:$0xf0]  ;;  %v3421_v54 = vld [vmem:[#allocation5 + $0x368] sm:$0xf] }
  0x6e   :  { %1433 = vmatpush.bf16.msra.mxu3 %v3674_v20  ;;  %v4290_v20 = vld [vmem:[#allocation5 + $0xb4] sm:$0xf0]  ;;  %v3038_v56 = vor.u32 %v4282_v48, %v3037_v47  ;;  %v3021_v59 = vld [vmem:[#allocation5 + $0x48] sm:$0xf] }
  0x6f   :  { %1395 = vmatpush.bf16.msra.mxu0 %v3274_v28  ;;  %v3453_v28 = vld [vmem:[#allocation5 + $0x3a8] sm:$0xf]  ;;  %v4314_v51 = vld [vmem:[#allocation5 + $0x174] sm:$0xf0] }
  0x70   :  { %1408 = vmatpush.bf16.msra.mxu1 %v3402_v29  ;;  %v4386_v29 = vld [vmem:[#allocation5 + $0x3b4] sm:$0xf0]  ;;  %v3277_v0 = vld [vmem:[#allocation5 + $0x248] sm:$0xf] }
  0x71   :  { %1421 = vmatpush.bf16.msra.mxu2 %v3530_v30  ;;  %v3070_v30 = vor.u32 %v4290_v20, %v3069_v19  ;;  %v3454_v38 = vor.u32 %v4386_v29, %v3453_v28  ;;  %v4346_v53 = vld [vmem:[#allocation5 + $0x274] sm:$0xf0]  ;;  %v3005_v9 = vld [vmem:[#allocation5 + $0x28] sm:$0xf] }
  0x72   :  { %1434 = vmatpush.bf16.msra.mxu3 %v3658_v35  ;;  %v4286_v35 = vld [vmem:[#allocation5 + $0x94] sm:$0xf0]  ;;  %v3294_v58 = vor.u32 %v4346_v53, %v3293_v52  ;;  %v3133_v11 = vld [vmem:[#allocation5 + $0x128] sm:$0xf] }
  0x73   :  { %1396 = vmatpush.bf16.msra.mxu0 %v3258_v42  ;;  %v3437_v42 = vld [vmem:[#allocation5 + $0x388] sm:$0xf]  ;;  %v3054_v44 = vor.u32 %v4286_v35, %v3053_v34  ;;  %v4378_v55 = vld [vmem:[#allocation5 + $0x374] sm:$0xf0] }
  0x74   :  { %1409 = vmatpush.bf16.msra.mxu1 %v3386_v45  ;;  %v3182_v45 = vor.u32 %v4318_v39, %v3181_v36  ;;  %v4278_v60 = vld [vmem:[#allocation5 + $0x54] sm:$0xf0]  ;;  %v3261_v14 = vld [vmem:[#allocation5 + $0x228] sm:$0xf]  ;;  %v4296_v39 = vld [vmem:[#allocation5 + $0xec] sm:$0xf] }
  0x75   :  { %1422 = vmatpush.bf16.msra.mxu2 %v3514_v46  ;;  %v3310_v46 = vor.u32 %v4350_v41, %v3309_v40  ;;  %v4310_v63 = vld [vmem:[#allocation5 + $0x154] sm:$0xf0]  ;;  %v2989_v19 = vld [vmem:[#allocation5 + $0x8] sm:$0xf]  ;;  %v3103_v40 = vld [vmem:[#allocation5 + $0xf8] sm:$0xf0] }
  0x76   :  { %1435 = vmatpush.bf16.msra.mxu3 %v3642_v50  ;;  %v3438_v50 = vor.u32 %v4382_v43, %v3437_v42  ;;  %v4306_v13 = vld [vmem:[#allocation5 + $0x134] sm:$0xf0]  ;;  %v3117_v25 = vld [vmem:[#allocation5 + $0x108] sm:$0xf]  ;;  %v4328_v43 = vld [vmem:[#allocation5 + $0x1ec] sm:$0xf]  ;;  %v3106_v48 = vor.u32 %v4296_v39, %v3103_v40 }
  0x77   :  { %1397 = vmatpush.bf16.msra.mxu0 %v3242_v57  ;;  %v3166_v57 = vor.u32 %v4314_v51, %v3165_v49  ;;  %v4338_v15 = vld [vmem:[#allocation5 + $0x234] sm:$0xf0]  ;;  %v3134_v23 = vor.u32 %v4306_v13, %v3133_v11  ;;  %v3245_v27 = vld [vmem:[#allocation5 + $0x208] sm:$0xf] }
  0x78   :  { %1410 = vmatpush.bf16.msra.mxu1 %v3370_v61  ;;  %v3149_v61 = vld [vmem:[#allocation5 + $0x148] sm:$0xf]  ;;  %v4270_v20 = vld [vmem:[#allocation5 + $0x14] sm:$0xf0] }
  0x79   :  { %1423 = vmatpush.bf16.msra.mxu2 %v3498_v62  ;;  %v3422_v62 = vor.u32 %v4378_v55, %v3421_v54  ;;  %v3150_v7 = vor.u32 %v4310_v63, %v3149_v61  ;;  %v4302_v26 = vld [vmem:[#allocation5 + $0x114] sm:$0xf0]  ;;  %v3741_v35 = vld [vmem:[#allocation5 + $0x5e8] sm:$0xf]  ;;  %v2990_v36 = vor.u32 %v4270_v20, %v2989_v19  ;;  %v4292_v54 = vld [vmem:[#allocation5 + $0xcc] sm:$0xf] }
  0x7a   :  { %1436 = vmatpush.bf16.msra.mxu3 %v3626_v1  ;;  %1398 = vmatmul.bf16.vlgmr.msra.gmra.mxu0 %v4810_v21  ;;  %v4342_v1 = vld [vmem:[#allocation5 + $0x254] sm:$0xf0]  ;;  %v3118_v41 = vor.u32 %v4302_v26, %v3117_v25  ;;  %v3597_v49 = vld [vmem:[#allocation5 + $0x4c8] sm:$0xf]  ;;  %v3087_v55 = vld [vmem:[#allocation5 + $0xd8] sm:$0xf0] }
  0x7b   :  { %1442 = vmatpush.bf16.msrb.mxu0 %v3102_v4  ;;  %1411 = vmatmul.bf16.vlgmr.msra.gmra.mxu1 %v4812_v22  ;;  %v3405_v4 = vld [vmem:[#allocation5 + $0x348] sm:$0xf]  ;;  %v3278_v8 = vor.u32 %v4342_v1, %v3277_v0  ;;  %v4334_v29 = vld [vmem:[#allocation5 + $0x214] sm:$0xf0]  ;;  %v3183_v19 = vld [vmem:[#allocation5 + $0x198] sm:$0xf0] }
  0x7c   :  { %1455 = vmatpush.bf16.msrb.mxu1 %v3230_v5  ;;  %1424 = vmatmul.bf16.vlgmr.msra.gmra.mxu2 %v4816_v33  ;;  %v4374_v5 = vld [vmem:[#allocation5 + $0x354] sm:$0xf0]  ;;  %v3246_v42 = vor.u32 %v4334_v29, %v3245_v27  ;;  %v3725_v51 = vld [vmem:[#allocation5 + $0x5c8] sm:$0xf] }
  0x7d   :  { %1468 = vmatpush.bf16.msrb.mxu2 %v3358_v6  ;;  %1437 = vmatmul.bf16.vlgmr.msra.gmra.mxu3 %v4818_v37  ;;  %v3022_v6 = vor.u32 %v4278_v60, %v3021_v59  ;;  %v3406_v12 = vor.u32 %v4374_v5, %v3405_v4  ;;  %v4426_v34 = vld [vmem:[#allocation5 + $0x4f4] sm:$0xf0]  ;;  %v3090_v60 = vor.u32 %v4292_v54, %v3087_v55  ;;  %v3581_v61 = vld [vmem:[#allocation5 + $0x4a8] sm:$0xf]  ;;  %v4288_v4 = vld [vmem:[#allocation5 + $0xac] sm:$0xf] }
  0x7e   :  { %1481 = vmatpush.bf16.msrb.mxu3 %v3486_v10  ;;  %v4274_v10 = vld [vmem:[#allocation5 + $0x34] sm:$0xf0]  ;;  %v3709_v63 = vld [vmem:[#allocation5 + $0x5a8] sm:$0xf]  ;;  %v3071_v5 = vld [vmem:[#allocation5 + $0xb8] sm:$0xf0] }
  0x7f   :  { %1443 = vmatpush.bf16.msrb.mxu0 %v3086_v16  ;;  %v3389_v16 = vld [vmem:[#allocation5 + $0x328] sm:$0xf]  ;;  %v4454_v53 = vld [vmem:[#allocation5 + $0x5d4] sm:$0xf0] }
  0x80   :  { %1456 = vmatpush.bf16.msrb.mxu1 %v3214_v17  ;;  %v4370_v17 = vld [vmem:[#allocation5 + $0x334] sm:$0xf0]  ;;  %v3726_v59 = vor.u32 %v4454_v53, %v3725_v51  ;;  %v3565_v11 = vld [vmem:[#allocation5 + $0x488] sm:$0xf] }
  0x81   :  { %1469 = vmatpush.bf16.msrb.mxu2 %v3342_v18  ;;  %v3006_v18 = vor.u32 %v4274_v10, %v3005_v9  ;;  %v3390_v28 = vor.u32 %v4370_v17, %v3389_v16  ;;  %v4450_v1 = vld [vmem:[#allocation5 + $0x5b4] sm:$0xf0]  ;;  %v3074_v10 = vor.u32 %v4288_v4, %v3071_v5  ;;  %v3693_v13 = vld [vmem:[#allocation5 + $0x588] sm:$0xf]  ;;  %v4284_v16 = vld [vmem:[#allocation5 + $0x8c] sm:$0xf] }
  0x82   :  { %1482 = vmatpush.bf16.msrb.mxu3 %v3470_v24  ;;  %v3262_v24 = vor.u32 %v4338_v15, %v3261_v14  ;;  %v3710_v9 = vor.u32 %v4450_v1, %v3709_v63  ;;  %v4446_v15 = vld [vmem:[#allocation5 + $0x594] sm:$0xf0]  ;;  %v3055_v17 = vld [vmem:[#allocation5 + $0x98] sm:$0xf0]  ;;  %v3549_v25 = vld [vmem:[#allocation5 + $0x468] sm:$0xf] }
  0x83   :  { %1444 = vmatpush.bf16.msrb.mxu0 %v3070_v30  ;;  %v3373_v30 = vld [vmem:[#allocation5 + $0x308] sm:$0xf]  ;;  %v4410_v26 = vld [vmem:[#allocation5 + $0x474] sm:$0xf0]  ;;  %v4268_v5 = vld [vmem:[#allocation5 + $0xc] sm:$0xf] }
  0x84   :  { %1457 = vmatpush.bf16.msrb.mxu1 %v3198_v31  ;;  %v4366_v31 = vld [vmem:[#allocation5 + $0x314] sm:$0xf0]  ;;  %v3677_v27 = vld [vmem:[#allocation5 + $0x568] sm:$0xf] }
  0x85   :  { %1470 = vmatpush.bf16.msrb.mxu2 %v3326_v32  ;;  %v3613_v32 = vld [vmem:[#allocation5 + $0x4e8] sm:$0xf]  ;;  %v4442_v29 = vld [vmem:[#allocation5 + $0x574] sm:$0xf0] }
  0x86   :  { %1483 = vmatpush.bf16.msrb.mxu3 %v3454_v38  ;;  %v4458_v38 = vld [vmem:[#allocation5 + $0x5f4] sm:$0xf0]  ;;  %v3533_v39 = vld [vmem:[#allocation5 + $0x448] sm:$0xf] }
  0x87   :  { %1445 = vmatpush.bf16.msrb.mxu0 %v3054_v44  ;;  %v3231_v44 = vld [vmem:[#allocation5 + $0x1f8] sm:$0xf0]  ;;  %v3742_v47 = vor.u32 %v4458_v38, %v3741_v35  ;;  %v3550_v35 = vor.u32 %v4410_v26, %v3549_v25  ;;  %v4406_v40 = vld [vmem:[#allocation5 + $0x454] sm:$0xf0]  ;;  %v3517_v51 = vld [vmem:[#allocation5 + $0x428] sm:$0xf] }
  0x88   :  { %1458 = vmatpush.bf16.msrb.mxu1 %v3182_v45  ;;  %v3374_v45 = vor.u32 %v4366_v31, %v3373_v30  ;;  %v3234_v52 = vor.u32 %v4328_v43, %v3231_v44  ;;  %v4280_v30 = vld [vmem:[#allocation5 + $0x6c] sm:$0xf]  ;;  %v3039_v31 = vld [vmem:[#allocation5 + $0x78] sm:$0xf0]  ;;  %v4438_v43 = vld [vmem:[#allocation5 + $0x554] sm:$0xf0] }
  0x89   :  { %1471 = vmatpush.bf16.msrb.mxu2 %v3310_v46  ;;  %v3614_v46 = vor.u32 %v4426_v34, %v3613_v32  ;;  %v4312_v32 = vld [vmem:[#allocation5 + $0x16c] sm:$0xf]  ;;  %v3167_v34 = vld [vmem:[#allocation5 + $0x178] sm:$0xf0]  ;;  %v3042_v38 = vor.u32 %v4280_v30, %v3039_v31  ;;  %v3645_v53 = vld [vmem:[#allocation5 + $0x528] sm:$0xf] }
  0x8a   :  { %1484 = vmatpush.bf16.msrb.mxu3 %v3438_v50  ;;  %v4422_v50 = vld [vmem:[#allocation5 + $0x4d4] sm:$0xf0]  ;;  %v4276_v44 = vld [vmem:[#allocation5 + $0x4c] sm:$0xf]  ;;  %v3629_v1 = vld [vmem:[#allocation5 + $0x508] sm:$0xf] }
  0x8b   :  { %1446 = vmatpush.bf16.msrb.mxu0 %v3038_v56  ;;  %v4324_v56 = vld [vmem:[#allocation5 + $0x1cc] sm:$0xf]  ;;  %v4434_v55 = vld [vmem:[#allocation5 + $0x534] sm:$0xf0]  ;;  %v3471_v31 = vld [vmem:[#allocation5 + $0x3d8] sm:$0xf0] }
  0x8c   :  { %1459 = vmatpush.bf16.msrb.mxu1 %v3166_v57  ;;  %v3215_v57 = vld [vmem:[#allocation5 + $0x1d8] sm:$0xf0]  ;;  %v3646_v63 = vor.u32 %v4434_v55, %v3645_v53  ;;  %v4430_v4 = vld [vmem:[#allocation5 + $0x514] sm:$0xf0]  ;;  %v4348_v53 = vld [vmem:[#allocation5 + $0x28c] sm:$0xf] }
  0x8d   :  { %1472 = vmatpush.bf16.msrb.mxu2 %v3294_v58  ;;  %v3598_v58 = vor.u32 %v4422_v50, %v3597_v49  ;;  %v3218_v0 = vor.u32 %v4324_v56, %v3215_v57  ;;  %v4272_v56 = vld [vmem:[#allocation5 + $0x2c] sm:$0xf]  ;;  %v3007_v57 = vld [vmem:[#allocation5 + $0x38] sm:$0xf0] }
  0x8e   :  { %1485 = vmatpush.bf16.msrb.mxu3 %v3422_v62  ;;  %v4418_v62 = vld [vmem:[#allocation5 + $0x4b4] sm:$0xf0]  ;;  %v4380_v55 = vld [vmem:[#allocation5 + $0x38c] sm:$0xf] }
  0x8f   :  { %1447 = vmatpush.bf16.msrb.mxu0 %v3022_v6  ;;  %v4320_v6 = vld [vmem:[#allocation5 + $0x1ac] sm:$0xf] }
  0x90   :  { %1460 = vmatpush.bf16.msrb.mxu1 %v3150_v7  ;;  %v3199_v7 = vld [vmem:[#allocation5 + $0x1b8] sm:$0xf0] }
  0x91   :  { %1473 = vmatpush.bf16.msrb.mxu2 %v3278_v8  ;;  %v3582_v8 = vor.u32 %v4418_v62, %v3581_v61  ;;  %v3202_v14 = vor.u32 %v4320_v6, %v3199_v7  ;;  %v3501_v61 = vld [vmem:[#allocation5 + $0x408] sm:$0xf]  ;;  %v4398_v62 = vld [vmem:[#allocation5 + $0x414] sm:$0xf0]  ;;  %v2991_v7 = vld [vmem:[#allocation5 + $0x18] sm:$0xf0] }
  0x92   :  { %1486 = vmatpush.bf16.msrb.mxu3 %v3406_v12  ;;  %v4414_v12 = vld [vmem:[#allocation5 + $0x494] sm:$0xf0] }
  0x93   :  { %1448 = vmatpush.bf16.msrb.mxu0 %v3006_v18  ;;  %v4316_v18 = vld [vmem:[#allocation5 + $0x18c] sm:$0xf]  ;;  %v3566_v20 = vor.u32 %v4414_v12, %v3565_v11  ;;  %v3359_v11 = vld [vmem:[#allocation5 + $0x2f8] sm:$0xf0] }
  0x94   :  { %1461 = vmatpush.bf16.msrb.mxu1 %v3134_v23  ;;  %v3694_v23 = vor.u32 %v4446_v15, %v3693_v13  ;;  %v4392_v12 = vld [vmem:[#allocation5 + $0x3ec] sm:$0xf]  ;;  %v3502_v13 = vor.u32 %v4398_v62, %v3501_v61 }
  0x95   :  { %1474 = vmatpush.bf16.msrb.mxu2 %v3262_v24  ;;  %v3058_v24 = vor.u32 %v4284_v16, %v3055_v17  ;;  %v4424_v15 = vld [vmem:[#allocation5 + $0x4ec] sm:$0xf]  ;;  %v3615_v16 = vld [vmem:[#allocation5 + $0x4f8] sm:$0xf0]  ;;  %v3630_v17 = vor.u32 %v4430_v4, %v3629_v1 }
  0x96   :  { %1487 = vmatpush.bf16.msrb.mxu3 %v3390_v28  ;;  %v3186_v28 = vor.u32 %v4316_v18, %v3183_v19  ;;  %v2994_v18 = vor.u32 %v4268_v5, %v2991_v7  ;;  %v4456_v19 = vld [vmem:[#allocation5 + $0x5ec] sm:$0xf]  ;;  %v3618_v26 = vor.u32 %v4424_v15, %v3615_v16  ;;  %v3279_v16 = vld [vmem:[#allocation5 + $0x258] sm:$0xf0] }
  0x97   :  { %1449 = vmatpush.bf16.msrb.mxu0 %v2990_v36  ;;  %v3678_v36 = vor.u32 %v4442_v29, %v3677_v27  ;;  %v4356_v27 = vld [vmem:[#allocation5 + $0x2cc] sm:$0xf] }
  0x98   :  { %1462 = vmatpush.bf16.msrb.mxu1 %v3118_v41  ;;  %v3661_v41 = vld [vmem:[#allocation5 + $0x548] sm:$0xf]  ;;  %v4388_v29 = vld [vmem:[#allocation5 + $0x3cc] sm:$0xf] }
  0x99   :  { %1475 = vmatpush.bf16.msrb.mxu2 %v3246_v42  ;;  %v3170_v42 = vor.u32 %v4312_v32, %v3167_v34  ;;  %v3662_v49 = vor.u32 %v4438_v43, %v3661_v41  ;;  %v4420_v32 = vld [vmem:[#allocation5 + $0x4cc] sm:$0xf]  ;;  %v3599_v34 = vld [vmem:[#allocation5 + $0x4d8] sm:$0xf0] }
  0x9a   :  { %1488 = vmatpush.bf16.msrb.mxu3 %v3374_v45  ;;  %1450 = vmatmul.bf16.vlgmr.msrb.gmra.mxu0 %v4804_v2  ;;  %v3023_v45 = vld [vmem:[#allocation5 + $0x58] sm:$0xf0]  ;;  %v4352_v41 = vld [vmem:[#allocation5 + $0x2ac] sm:$0xf] }
  0x9b   :  { %1494 = vmatpush.bf16.msra.mxu0 %v3614_v46  ;;  %1463 = vmatmul.bf16.vlgmr.msrb.gmra.mxu1 %v4806_v3  ;;  %v4308_v46 = vld [vmem:[#allocation5 + $0x14c] sm:$0xf]  ;;  %v3026_v50 = vor.u32 %v4276_v44, %v3023_v45  ;;  %v3455_v45 = vld [vmem:[#allocation5 + $0x3b8] sm:$0xf0] }
  0x9c   :  { %1507 = vmatpush.bf16.msra.mxu1 %v3742_v47  ;;  %1476 = vmatmul.bf16.vlgmr.msrb.gmra.mxu2 %v4810_v21  ;;  %v3151_v47 = vld [vmem:[#allocation5 + $0x158] sm:$0xf0]  ;;  %v4384_v43 = vld [vmem:[#allocation5 + $0x3ac] sm:$0xf] }
  0x9d   :  { %1520 = vmatpush.bf16.msra.mxu2 %v3106_v48  ;;  %1489 = vmatmul.bf16.vlgmr.msrb.gmra.mxu3 %v4812_v22  ;;  %v3534_v48 = vor.u32 %v4406_v40, %v3533_v39  ;;  %v3154_v54 = vor.u32 %v4308_v46, %v3151_v47  ;;  %v3474_v39 = vor.u32 %v4388_v29, %v3471_v31  ;;  %v4416_v46 = vld [vmem:[#allocation5 + $0x4ac] sm:$0xf]  ;;  %v3583_v47 = vld [vmem:[#allocation5 + $0x4b8] sm:$0xf0] }
  0x9e   :  { %1533 = vmatpush.bf16.msra.mxu3 %v3234_v52  ;;  %v4402_v52 = vld [vmem:[#allocation5 + $0x434] sm:$0xf0]  ;;  %v3602_v40 = vor.u32 %v4420_v32, %v3599_v34  ;;  %v4376_v1 = vld [vmem:[#allocation5 + $0x36c] sm:$0xf]  ;;  %v3263_v32 = vld [vmem:[#allocation5 + $0x238] sm:$0xf0] }
  0x9f   :  { %1495 = vmatpush.bf16.msra.mxu0 %v3598_v58  ;;  %v4304_v58 = vld [vmem:[#allocation5 + $0x12c] sm:$0xf] }
  0xa0   :  { %1508 = vmatpush.bf16.msra.mxu1 %v3726_v59  ;;  %v3135_v59 = vld [vmem:[#allocation5 + $0x138] sm:$0xf0]  ;;  %v4408_v7 = vld [vmem:[#allocation5 + $0x46c] sm:$0xf] }
  0xa1   :  { %1521 = vmatpush.bf16.msra.mxu2 %v3090_v60  ;;  %v3518_v60 = vor.u32 %v4402_v52, %v3517_v51  ;;  %v3138_v6 = vor.u32 %v4304_v58, %v3135_v59  ;;  %v3458_v51 = vor.u32 %v4384_v43, %v3455_v45  ;;  %v3586_v52 = vor.u32 %v4416_v46, %v3583_v47  ;;  %v4412_v58 = vld [vmem:[#allocation5 + $0x48c] sm:$0xf]  ;;  %v3567_v59 = vld [vmem:[#allocation5 + $0x498] sm:$0xf0] }
  0xa2   :  { %1534 = vmatpush.bf16.msra.mxu3 %v3218_v0  ;;  %v3010_v0 = vor.u32 %v4272_v56, %v3007_v57  ;;  %v3439_v57 = vld [vmem:[#allocation5 + $0x398] sm:$0xf0]  ;;  %v4368_v34 = vld [vmem:[#allocation5 + $0x32c] sm:$0xf] }
  0xa3   :  { %1496 = vmatpush.bf16.msra.mxu0 %v3582_v8  ;;  %v4300_v8 = vld [vmem:[#allocation5 + $0x10c] sm:$0xf]  ;;  %v3442_v62 = vor.u32 %v4380_v55, %v3439_v57  ;;  %v3503_v55 = vld [vmem:[#allocation5 + $0x418] sm:$0xf0] }
  0xa4   :  { %1509 = vmatpush.bf16.msra.mxu1 %v3710_v9  ;;  %v3119_v9 = vld [vmem:[#allocation5 + $0x118] sm:$0xf0]  ;;  %v4332_v45 = vld [vmem:[#allocation5 + $0x20c] sm:$0xf] }
  0xa5   :  { %1522 = vmatpush.bf16.msra.mxu2 %v3074_v10  ;;  %v4360_v10 = vld [vmem:[#allocation5 + $0x2ec] sm:$0xf] }
  0xa6   :  { %1535 = vmatpush.bf16.msra.mxu3 %v3202_v14  ;;  %v3487_v14 = vld [vmem:[#allocation5 + $0x3f8] sm:$0xf0] }
  0xa7   :  { %1497 = vmatpush.bf16.msra.mxu0 %v3566_v20  ;;  %v3743_v20 = vld [vmem:[#allocation5 + $0x5f8] sm:$0xf0]  ;;  %v3490_v25 = vor.u32 %v4392_v12, %v3487_v14 }
  0xa8   :  { %1510 = vmatpush.bf16.msra.mxu1 %v3694_v23  ;;  %v3122_v23 = vor.u32 %v4300_v8, %v3119_v9  ;;  %v3746_v30 = vor.u32 %v4456_v19, %v3743_v20  ;;  %v3551_v8 = vld [vmem:[#allocation5 + $0x478] sm:$0xf0]  ;;  %v4440_v9 = vld [vmem:[#allocation5 + $0x56c] sm:$0xf] }
  0xa9   :  { %1523 = vmatpush.bf16.msra.mxu2 %v3058_v24  ;;  %v3362_v24 = vor.u32 %v4360_v10, %v3359_v11  ;;  %v3679_v10 = vld [vmem:[#allocation5 + $0x578] sm:$0xf0]  ;;  %v3554_v15 = vor.u32 %v4408_v7, %v3551_v8  ;;  %v4404_v20 = vld [vmem:[#allocation5 + $0x44c] sm:$0xf] }
  0xaa   :  { %1536 = vmatpush.bf16.msra.mxu3 %v3186_v28  ;;  %v3343_v28 = vld [vmem:[#allocation5 + $0x2d8] sm:$0xf0]  ;;  %v3682_v19 = vor.u32 %v4440_v9, %v3679_v10  ;;  %v3833_v10 = vld [vmem:[#allocation8 + $0xa0] sm:$0xf] }
  0xab   :  { %1498 = vmatpush.bf16.msra.mxu0 %v3550_v35  ;;  %v4452_v35 = vld [vmem:[#allocation5 + $0x5cc] sm:$0xf] }
  0xac   :  { %1511 = vmatpush.bf16.msra.mxu1 %v3678_v36  ;;  %v3727_v36 = vld [vmem:[#allocation5 + $0x5d8] sm:$0xf0] }
  0xad   :  { %1524 = vmatpush.bf16.msra.mxu2 %v3042_v38  ;;  %v3346_v38 = vor.u32 %v4356_v27, %v3343_v28  ;;  %v3730_v44 = vor.u32 %v4452_v35, %v3727_v36  ;;  %v4336_v28 = vld [vmem:[#allocation5 + $0x22c] sm:$0xf] }
  0xae   :  { %1537 = vmatpush.bf16.msra.mxu3 %v3170_v42  ;;  %v3327_v42 = vld [vmem:[#allocation5 + $0x2b8] sm:$0xf0] }
  0xaf   :  { %1499 = vmatpush.bf16.msra.mxu0 %v3534_v48  ;;  %v4448_v48 = vld [vmem:[#allocation5 + $0x5ac] sm:$0xf] }
  0xb0   :  { %1512 = vmatpush.bf16.msra.mxu1 %v3662_v49  ;;  %v3711_v49 = vld [vmem:[#allocation5 + $0x5b8] sm:$0xf0] }
  0xb1   :  { %1525 = vmatpush.bf16.msra.mxu2 %v3026_v50  ;;  %v3330_v50 = vor.u32 %v4352_v41, %v3327_v42  ;;  %v3714_v56 = vor.u32 %v4448_v48, %v3711_v49  ;;  %v4432_v41 = vld [vmem:[#allocation5 + $0x52c] sm:$0xf]  ;;  %v3647_v42 = vld [vmem:[#allocation5 + $0x538] sm:$0xf0] }
  0xb2   :  { %1538 = vmatpush.bf16.msra.mxu3 %v3154_v54  ;;  %v3311_v54 = vld [vmem:[#allocation5 + $0x298] sm:$0xf0]  ;;  %v4364_v49 = vld [vmem:[#allocation5 + $0x30c] sm:$0xf] }
  0xb3   :  { %1500 = vmatpush.bf16.msra.mxu0 %v3518_v60  ;;  %v4444_v60 = vld [vmem:[#allocation5 + $0x58c] sm:$0xf]  ;;  %v3314_v61 = vor.u32 %v4348_v53, %v3311_v54  ;;  %v3247_v48 = vld [vmem:[#allocation5 + $0x218] sm:$0xf0]  ;;  %v3650_v53 = vor.u32 %v4432_v41, %v3647_v42 }
  0xb4   :  { %1513 = vmatpush.bf16.msra.mxu1 %v3646_v63  ;;  %v4344_v63 = vld [vmem:[#allocation5 + $0x26c] sm:$0xf] }
  0xb5   :  { %1526 = vmatpush.bf16.msra.mxu2 %v3010_v0  ;;  %v3295_v0 = vld [vmem:[#allocation5 + $0x278] sm:$0xf0]  ;;  %v4396_v54 = vld [vmem:[#allocation5 + $0x40c] sm:$0xf] }
  0xb6   :  { %1539 = vmatpush.bf16.msra.mxu3 %v3138_v6  ;;  %v3423_v6 = vld [vmem:[#allocation5 + $0x378] sm:$0xf0]  ;;  %v3298_v12 = vor.u32 %v4344_v63, %v3295_v0 }
  0xb7   :  { %1501 = vmatpush.bf16.msra.mxu0 %v3502_v13  ;;  %v1295_v11 = vpop.f32.mrf.mxu0  ;;  %v4340_v13 = vld [vmem:[#allocation5 + $0x24c] sm:$0xf]  ;;  %v3426_v14 = vor.u32 %v4376_v1, %v3423_v6  ;;  %v3849_v1 = vld [vmem:[#allocation8 + $0xc0] sm:$0xf] }
  0xb8   :  { %1514 = vmatpush.bf16.msra.mxu1 %v3630_v17  ;;  %v4836_v4 = vpop.f32.mrf.mxu1  ;;  %v4372_v17 = vld [vmem:[#allocation5 + $0x34c] sm:$0xf]  ;;  %v3282_v27 = vor.u32 %v4340_v13, %v3279_v16  ;;  %v3817_v13 = vld [vmem:[#allocation8 + $0x80] sm:$0xf] }
  0xb9   :  { %1527 = vmatpush.bf16.msra.mxu2 %v2994_v18  ;;  %v3407_v18 = vld [vmem:[#allocation5 + $0x358] sm:$0xf0] }
  0xba   :  { %1540 = vmatpush.bf16.msra.mxu3 %v3122_v23  ;;  %1502 = vmatmul.bf16.vlgmr.msra.gmra.mxu0 %v4816_v33  ;;  %v3535_v23 = vld [vmem:[#allocation5 + $0x458] sm:$0xf0]  ;;  %v3410_v29 = vor.u32 %v4372_v17, %v3407_v18 }
  0xbb   :  { %1546 = vmatpush.bf16.msrb.mxu0 %v3362_v24  ;;  %1515 = vmatmul.bf16.vlgmr.msra.gmra.mxu1 %v4818_v37  ;;  %v4838_v24 = vld [vmem:[#allocation7] sm:$0xf] }
  0xbc   :  { %1559 = vmatpush.bf16.msrb.mxu1 %v3490_v25  ;;  %1528 = vmatmul.bf16.vlgmr.msra.gmra.mxu2 %v4804_v2  ;;  %v3695_v2 = vld [vmem:[#allocation5 + $0x598] sm:$0xf0]  ;;  %v4436_v25 = vld [vmem:[#allocation5 + $0x54c] sm:$0xf]  ;;  %v297_v31 = vperm.slane %v4838_v24, 0 }
  0xbd   :  { %1572 = vmatpush.bf16.msrb.mxu2 %v3618_v26  ;;  %1541 = vmatmul.bf16.vlgmr.msra.gmra.mxu3 %v4806_v3  ;;  %v3570_v3 = vor.u32 %v4412_v58, %v3567_v59  ;;  %v3698_v5 = vor.u32 %v4444_v60, %v3695_v2  ;;  %v3663_v26 = vld [vmem:[#allocation5 + $0x558] sm:$0xf0]  ;;  %v3865_v59 = vld [vmem:[#allocation8 + $0xe0] sm:$0xf]  ;;  %v4489_v60 = vld [vmem:[#allocation8 + $0xec] sm:$0xf0]  ;;  %v3250_v2 = vor.u32 %v4332_v45, %v3247_v48 }
  0xbe   :  { %1585 = vmatpush.bf16.msrb.mxu3 %v3746_v30  ;;  %v3538_v30 = vor.u32 %v4404_v20, %v3535_v23  ;;  %v3666_v36 = vor.u32 %v4436_v25, %v3663_v26  ;;  %v3631_v58 = vld [vmem:[#allocation5 + $0x518] sm:$0xf0]  ;;  %v3866_v0 = vor.u32 %v4489_v60, %v3865_v59  ;;  %v3785_v23 = vld [vmem:[#allocation8 + $0x40] sm:$0xf]  ;;  %v4469_v25 = vld [vmem:[#allocation8 + $0x4c] sm:$0xf0] }
  0xbf   :  { %1547 = vmatpush.bf16.msrb.mxu0 %v3346_v38  ;;  %v3391_v38 = vld [vmem:[#allocation5 + $0x338] sm:$0xf0]  ;;  %v1297_v43 = vpop.f32.mrf.mxu0  ;;  %v4521_v26 = vld [vmem:[#allocation8 + $0x1ec] sm:$0xf0]  ;;  %v3753_v48 = vld [vmem:[#allocation8] sm:$0xf] }
  0xc0   :  { %1560 = vmatpush.bf16.msrb.mxu1 %v3474_v39  ;;  %v1310_v35 = vpop.f32.mrf.mxu1  ;;  %v4400_v39 = vld [vmem:[#allocation5 + $0x42c] sm:$0xf]  ;;  %v3394_v46 = vor.u32 %v4368_v34, %v3391_v38  ;;  %v3786_v34 = vor.u32 %v4469_v25, %v3785_v23  ;;  %v4517_v38 = vld [vmem:[#allocation8 + $0x1cc] sm:$0xf0] }
  0xc1   :  { %1573 = vmatpush.bf16.msrb.mxu2 %v3602_v40  ;;  %v3519_v40 = vld [vmem:[#allocation5 + $0x438] sm:$0xf0] }
  0xc2   :  { %1586 = vmatpush.bf16.msrb.mxu3 %v3730_v44  ;;  %v3266_v44 = vor.u32 %v4336_v28, %v3263_v32  ;;  %v3522_v47 = vor.u32 %v4400_v39, %v3519_v40  ;;  %v3769_v39 = vld [vmem:[#allocation8 + $0x20] sm:$0xf]  ;;  %v4465_v40 = vld [vmem:[#allocation8 + $0x2c] sm:$0xf0] }
  0xc3   :  { %1548 = vmatpush.bf16.msrb.mxu0 %v3330_v50  ;;  %v3375_v50 = vld [vmem:[#allocation5 + $0x318] sm:$0xf0] }
  0xc4   :  { %1561 = vmatpush.bf16.msrb.mxu1 %v3458_v51 }
  0xc5   :  { %1574 = vmatpush.bf16.msrb.mxu2 %v3586_v52  ;;  %v1296_v52 = vadd.f32 %v1295_v11, %v297_v31  ;;  %v4481_v11 = vld [vmem:[#allocation8 + $0xac] sm:$0xf0] }
  0xc6   :  { %1587 = vmatpush.bf16.msrb.mxu3 %v3714_v56  ;;  %v1321_v51 = vpop.f32.mrf.mxu2  ;;  %v4428_v56 = vld [vmem:[#allocation5 + $0x50c] sm:$0xf] }
  0xc7   :  { %1549 = vmatpush.bf16.msrb.mxu0 %v3314_v61  ;;  %v1334_v57 = vpop.f32.mrf.mxu3  ;;  %v3378_v61 = vor.u32 %v4364_v49, %v3375_v50  ;;  %v3634_v63 = vor.u32 %v4428_v56, %v3631_v58  ;;  %v4461_v49 = vld [vmem:[#allocation8 + $0xc] sm:$0xf0] }
  0xc8   :  { %1562 = vmatpush.bf16.msrb.mxu1 %v3442_v62  ;;  %v3506_v62 = vor.u32 %v4396_v54, %v3503_v55  ;;  %v4513_v50 = vld [vmem:[#allocation8 + $0x1ac] sm:$0xf0]  ;;  %v4487_v54 = vld [vmem:[#allocation8 + $0xe4] sm:$0xf]  ;;  %v3867_v55 = vld [vmem:[#allocation8 + $0xf0] sm:$0xf0]  ;;  %v3754_v60 = vor.u32 %v4461_v49, %v3753_v48 }
  0xc9   :  { %1575 = vmatpush.bf16.msrb.mxu2 %v3570_v3  ;;  %v1309_v3 = vadd.f32 %v4836_v4, %v1296_v52  ;;  %v4467_v48 = vld [vmem:[#allocation8 + $0x44] sm:$0xf]  ;;  %v3787_v49 = vld [vmem:[#allocation8 + $0x50] sm:$0xf0] }
  0xca   :  { %1588 = vmatpush.bf16.msrb.mxu3 %v3698_v5  ;;  %v4485_v5 = vld [vmem:[#allocation8 + $0xcc] sm:$0xf0] }
  0xcb   :  { %1550 = vmatpush.bf16.msrb.mxu0 %v3298_v12  ;;  %v1322_v7 = vadd.f32 %v1321_v51, %v1309_v3  ;;  %v3850_v8 = vor.u32 %v4485_v5, %v3849_v1  ;;  %v3834_v12 = vor.u32 %v4481_v11, %v3833_v10  ;;  %v298_v5 = vperm.slane %v4838_v24, 1  ;;  %v4505_v10 = vld [vmem:[#allocation8 + $0x16c] sm:$0xf0] }
  0xcc   :  { %1563 = vmatpush.bf16.msrb.mxu1 %v3426_v14  ;;  %v4477_v14 = vld [vmem:[#allocation8 + $0x8c] sm:$0xf0] }
  0xcd   :  { %1576 = vmatpush.bf16.msrb.mxu2 %v3554_v15  ;;  %v1335_v4 = vadd.f32 %v1334_v57, %v1322_v7  ;;  %v3818_v18 = vor.u32 %v4477_v14, %v3817_v13 }
  0xce   :  { %1589 = vmatpush.bf16.msrb.mxu3 %v3682_v19  ;;  %v1323_v6 = vpop.f32.mrf.mxu2  ;;  %v3801_v19 = vld [vmem:[#allocation8 + $0x60] sm:$0xf] }
  0xcf   :  { %1551 = vmatpush.bf16.msrb.mxu0 %v3282_v27  ;;  %v1336_v9 = vpop.f32.mrf.mxu3 }
  0xd0   :  { %1564 = vmatpush.bf16.msrb.mxu1 %v3410_v29 }
  0xd1   :  { %1577 = vmatpush.bf16.msrb.mxu2 %v3538_v30 }
  0xd2   :  { %1590 = vmatpush.bf16.msrb.mxu3 %v3666_v36  ;;  %v3977_v36 = vld [vmem:[#allocation8 + $0x1c0] sm:$0xf] }
  0xd3   :  { %1552 = vmatpush.bf16.msrb.mxu0 %v3266_v44  ;;  %v3978_v41 = vor.u32 %v4517_v38, %v3977_v36  ;;  %v3803_v36 = vld [vmem:[#allocation8 + $0x70] sm:$0xf0] }
  0xd4   :  { %1565 = vmatpush.bf16.msrb.mxu1 %v3394_v46  ;;  %v3770_v46 = vor.u32 %v4465_v40, %v3769_v39 }
  0xd5   :  { %1578 = vmatpush.bf16.msrb.mxu2 %v3522_v47  ;;  %v3961_v47 = vld [vmem:[#allocation8 + $0x1a0] sm:$0xf] }
  0xd6   :  { %1591 = vmatpush.bf16.msrb.mxu3 %v3650_v53  ;;  %v3962_v56 = vor.u32 %v4513_v50, %v3961_v47  ;;  %v3995_v47 = vld [vmem:[#allocation8 + $0x1f0] sm:$0xf0] }
  0xd7   :  { %1553 = vmatpush.bf16.msrb.mxu0 %v3250_v2  ;;  %v1347_v15 = vpop.f32.mrf.mxu0  ;;  %v3945_v2 = vld [vmem:[#allocation8 + $0x180] sm:$0xf] }
  0xd8   :  { %1566 = vmatpush.bf16.msrb.mxu1 %v3378_v61  ;;  %v1348_v16 = vadd.f32 %v1347_v15, %v1335_v4  ;;  %v1360_v17 = vpop.f32.mrf.mxu1  ;;  %v3870_v61 = vor.u32 %v4487_v54, %v3867_v55  ;;  %v4479_v4 = vld [vmem:[#allocation8 + $0xa4] sm:$0xf] }
  0xd9   :  { %1579 = vmatpush.bf16.msrb.mxu2 %v3506_v62  ;;  %v4509_v62 = vld [vmem:[#allocation8 + $0x18c] sm:$0xf0] }
  0xda   :  { %1592 = vmatpush.bf16.msrb.mxu3 %v3634_v63  ;;  %1554 = vmatmul.bf16.vlgmr.msrb.gmra.mxu0 %v4810_v21  ;;  %v4473_v21 = vld [vmem:[#allocation8 + $0x6c] sm:$0xf0]  ;;  %v4846_v20 = vadd.f32 %v1360_v17, %v1348_v16  ;;  %v4483_v63 = vld [vmem:[#allocation8 + $0xc4] sm:$0xf]  ;;  %v3946_v1 = vor.u32 %v4509_v62, %v3945_v2  ;;  %v3913_v17 = vld [vmem:[#allocation8 + $0x140] sm:$0xf] }
  0xdb   :  { %2556 = vmatpush.bf16.msra.mxu0 %v3866_v0  ;;  %1567 = vmatmul.bf16.vlgmr.msrb.gmra.mxu1 %v4812_v22  ;;  %v3851_v0 = vld [vmem:[#allocation8 + $0xd0] sm:$0xf0]  ;;  %v4463_v2 = vld [vmem:[#allocation8 + $0x24] sm:$0xf] }
  0xdc   :  { %1580 = vmatmul.bf16.vlgmr.msrb.gmra.mxu2 %v4816_v33  ;;  %v4849_v22 = vmul.f32 0.70710677, %v4846_v20  ;;  %v3802_v33 = vor.u32 %v4473_v21, %v3801_v19  ;;  %v3854_v9 = vor.u32 %v4483_v63, %v3851_v0  ;;  %v4501_v19 = vld [vmem:[#allocation8 + $0x14c] sm:$0xf0] }
  0xdd   :  { %1593 = vmatmul.bf16.vlgmr.msrb.gmra.mxu3 %v4818_v37  ;;  %v3993_v37 = vld [vmem:[#allocation8 + $0x1e0] sm:$0xf]  ;;  %v3914_v23 = vor.u32 %v4501_v19, %v3913_v17 }
  0xde   :  { %v1606_v27 = vmul.f32 %v4849_v22, %v4849_v22  ;;  %v3994_v29 = vor.u32 %v4521_v26, %v3993_v37  ;;  %v3819_v37 = vld [vmem:[#allocation8 + $0x90] sm:$0xf0] }
  0xdf   :  { %2557 = vmatpush.bf16.msra.mxu0 %v3850_v8  ;;  %v1373_v28 = vpop.f32.mrf.mxu2  ;;  %v1349_v31 = vpop.f32.mrf.mxu0  ;;  %v3929_v8 = vld [vmem:[#allocation8 + $0x160] sm:$0xf] }
  0xe0   :  { %v4853_v30 = vpop.f32.mrf.mxu3  ;;  %v4855_v32 = vmin.f32 %v1606_v27, 16.0  ;;  %v1362_v35 = vpop.f32.mrf.mxu1  ;;  %2569 = vmatpush.bf16.msra.mxu1 %v3994_v29  ;;  %v3930_v13 = vor.u32 %v4505_v10, %v3929_v8  ;;  %v1374_v14 = vadd.f32 %v1373_v28, %v298_v5  ;;  %v3897_v28 = vld [vmem:[#allocation8 + $0x120] sm:$0xf]  ;;  %v4497_v31 = vld [vmem:[#allocation8 + $0x12c] sm:$0xf0] }
  0xe1   :  { %v4471_v35 = vld [vmem:[#allocation8 + $0x64] sm:$0xf]  ;;  %v3898_v40 = vor.u32 %v4497_v31, %v3897_v28  ;;  %v3963_v10 = vld [vmem:[#allocation8 + $0x1b0] sm:$0xf0] }
  0xe2   :  { %v1608_v42 = vmul.f32 2.1237322e-06, %v4855_v32  ;;  %v1619_v43 = vmul.f32 3.8918573e-05, %v4855_v32  ;;  %v1387_v25 = vadd.f32 %v4853_v30, %v1374_v14  ;;  %v4493_v30 = vld [vmem:[#allocation8 + $0x10c] sm:$0xf0] }
  0xe3   :  { %2558 = vmatpush.bf16.msra.mxu0 %v3834_v12  ;;  %v3835_v12 = vld [vmem:[#allocation8 + $0xb0] sm:$0xf0] }
  0xe4   :  { %v1609_v44 = vadd.f32 0.00028619796, %v1608_v42  ;;  %v1620_v45 = vadd.f32 0.001143296, %v1619_v43  ;;  %2570 = vmatpush.bf16.msra.mxu1 %v3978_v41  ;;  %v3881_v42 = vld [vmem:[#allocation8 + $0x100] sm:$0xf] }
  0xe6   :  { %v1610_v51 = vmul.f32 %v1609_v44, %v4855_v32  ;;  %v1621_v52 = vmul.f32 %v1620_v45, %v4855_v32  ;;  %v3806_v44 = vor.u32 %v4471_v35, %v3803_v36  ;;  %v3882_v45 = vor.u32 %v4493_v30, %v3881_v42  ;;  %v4503_v36 = vld [vmem:[#allocation8 + $0x164] sm:$0xf]  ;;  %v3873_v30 = vld [vmem:[#allocation8 + $0xe8] sm:$0xf] }
  0xe7   :  { %2559 = vmatpush.bf16.msra.mxu0 %v3818_v18  ;;  %v1375_v53 = vpop.f32.mrf.mxu2  ;;  %v3838_v18 = vor.u32 %v4479_v4, %v3835_v12  ;;  %v4459_v4 = vld [vmem:[#allocation8 + $0x4] sm:$0xf]  ;;  %v3755_v12 = vld [vmem:[#allocation8 + $0x10] sm:$0xf0] }
  0xe8   :  { %v1388_v57 = vpop.f32.mrf.mxu3  ;;  %v1611_v58 = vadd.f32 0.0036580483, %v1610_v51  ;;  %v1622_v59 = vadd.f32 0.014752088, %v1621_v52  ;;  %2571 = vmatpush.bf16.msra.mxu1 %v3962_v56 }
  0xe9   :  { %v3790_v57 = vor.u32 %v4467_v48, %v3787_v49  ;;  %v3915_v48 = vld [vmem:[#allocation8 + $0x150] sm:$0xf0] }
  0xea   :  { %v1623_v3 = vmul.f32 %v1622_v59, %v4855_v32  ;;  %v1612_v6 = vmul.f32 %v1611_v58, %v4855_v32  ;;  %v4515_v58 = vld [vmem:[#allocation8 + $0x1c4] sm:$0xf]  ;;  %v3979_v59 = vld [vmem:[#allocation8 + $0x1d0] sm:$0xf0] }
  0xeb   :  { %2560 = vmatpush.bf16.msra.mxu0 %v3802_v33  ;;  %v4475_v33 = vld [vmem:[#allocation8 + $0x84] sm:$0xf] }
  0xec   :  { %v1624_v7 = vadd.f32 0.112945676, %v1623_v3  ;;  %2572 = vmatpush.bf16.msra.mxu1 %v3946_v1  ;;  %v1613_v15 = vadd.f32 0.05243302, %v1612_v6  ;;  %v3822_v29 = vor.u32 %v4475_v33, %v3819_v37  ;;  %v3982_v3 = vor.u32 %v4515_v58, %v3979_v59  ;;  %v4507_v37 = vld [vmem:[#allocation8 + $0x184] sm:$0xf] }
  0xed   :  { %v3758_v33 = vor.u32 %v4459_v4, %v3755_v12  ;;  %v4491_v4 = vld [vmem:[#allocation8 + $0x104] sm:$0xf]  ;;  %v3883_v12 = vld [vmem:[#allocation8 + $0x110] sm:$0xf0] }
  0xee   :  { %v1625_v11 = vmul.f32 %v1624_v7, %v4855_v32  ;;  %v1614_v26 = vmul.f32 %v1613_v15, %v4855_v32 }
  0xef   :  { %2561 = vmatpush.bf16.msra.mxu0 %v3786_v34 }
  0xf0   :  { %v1626_v16 = vadd.f32 0.4994258, %v1625_v11  ;;  %2573 = vmatpush.bf16.msra.mxu1 %v3930_v13  ;;  %v1615_v41 = vadd.f32 0.18741608, %v1614_v26 }
  0xf2   :  { %v1627_v21 = vmul.f32 %v1626_v16, %v4855_v32  ;;  %v1616_v53 = vmul.f32 %v1615_v41, %v4855_v32  ;;  %v1598_v41 = vmul.f32 0.5, %v4846_v20 }
  0xf3   :  { %2562 = vmatpush.bf16.msra.mxu0 %v3770_v46  ;;  %v4519_v46 = vld [vmem:[#allocation8 + $0x1e4] sm:$0xf] }
  0xf4   :  { %v4868_v27 = vadd.f32 1.0, %v1627_v21  ;;  %2574 = vmatpush.bf16.msra.mxu1 %v3914_v23  ;;  %v3998_v50 = vor.u32 %v4519_v46, %v3995_v47  ;;  %v1617_v1 = vadd.f32 1.1283791, %v1616_v53  ;;  %v3947_v23 = vld [vmem:[#allocation8 + $0x190] sm:$0xf0] }
  0xf5   :  { %v4499_v47 = vld [vmem:[#allocation8 + $0x144] sm:$0xf] }
  0xf6   :  { %4595 = vrcp.f32 %v4868_v27  ;;  %v1640_v32 = vand.u32 2147483648, %v4868_v27  ;;  %v1638_v7 = vand.u32 2147483647, %v4868_v27  ;;  %vm1634_vm1 = vweird.f32 %v4868_v27 }
  0xf7   :  { %2563 = vmatpush.bf16.msra.mxu0 %v3754_v60  ;;  %v1399_v34 = vpop.f32.mrf.mxu0  ;;  %v1618_v19 = vmul.f32 %v1617_v1, %v4849_v22  ;;  %v3931_v22 = vld [vmem:[#allocation8 + $0x170] sm:$0xf0] }
  0xf8   :  { %v1400_v38 = vadd.f32 %v1399_v34, %v1387_v25  ;;  %v1412_v39 = vpop.f32.mrf.mxu1  ;;  %2575 = vmatpush.bf16.msra.mxu1 %v3898_v40  ;;  %v1641_v16 = vor.u32 1.1754944e-38, %v1640_v32  ;;  %vm1639_vm3 = vcmp.eq.f32.partialorder %v1638_v7, 8.507059e+37  ;;  %v3934_v40 = vor.u32 %v4503_v36, %v3931_v22  ;;  %v4541_v36 = vld [vmem:[#allocation8 + $0x28c] sm:$0xf0] }
  0xfa   :  { %v1413_v43 = vadd.f32 %v1412_v39, %v1400_v38 }
  0xfb   :  { %2608 = vmatpush.bf16.msrb.mxu0 %v3870_v61  ;;  %v3771_v61 = vld [vmem:[#allocation8 + $0x30] sm:$0xf0] }
  0xfc   :  { %v4596_v52 = vpop.eup %4595  ;;  %2576 = vmatpush.bf16.msra.mxu1 %v3882_v45  ;;  %v3774_v8 = vor.u32 %v4463_v2, %v3771_v61  ;;  %v4495_v61 = vld [vmem:[#allocation8 + $0x124] sm:$0xf] }
  0xfd   :  { %v1630_v56 = vmul.f32 %v4596_v52, %v4868_v27  ;;  %vm1635_vm0 = vweird.f32 %v4596_v52  ;;  %v3950_v27 = vor.u32 %v4507_v37, %v3947_v23 }
  0xfe   :  { %vm1636_vm2 = vmor %vm1634_vm1, %vm1635_vm0 }
  0xff   :  { %2609 = vmatpush.bf16.msrb.mxu0 %v3854_v9  ;;  %v1425_v51 = vpop.f32.mrf.mxu2  ;;  %v1401_v62 = vpop.f32.mrf.mxu0  ;;  %v1631_v63 = vsub.f32 1.0, %v1630_v56  ;;  %v4511_v9 = vld [vmem:[#allocation8 + $0x1a4] sm:$0xf]  ;;  %v4121_v56 = vld [vmem:[#allocation8 + $0x2e0] sm:$0xf] }
 0x100   :  { %v1426_v54 = vadd.f32 %v1425_v51, %v1413_v43  ;;  %v1438_v55 = vpop.f32.mrf.mxu3  ;;  %2621 = vmatpush.bf16.msrb.mxu1 %v3998_v50  ;;  %v1414_v0 = vpop.f32.mrf.mxu1  ;;  %v3966_v13 = vor.u32 %v4511_v9, %v3963_v10  ;;  %v4490_v43 = vld [vmem:[#allocation8 + $0xf4] sm:$0xf0]  ;;  %v3918_v51 = vor.u32 %v4499_v47, %v3915_v48  ;;  %v3899_v62 = vld [vmem:[#allocation8 + $0x130] sm:$0xf0]  ;;  %v4549_v9 = vld [vmem:[#allocation8 + $0x2cc] sm:$0xf0] }
 0x101   :  { %v1632_v6 = vmul.f32 %v4596_v52, %v1631_v63  ;;  %v3874_v50 = vor.u32 %v4490_v43, %v3873_v30  ;;  %v3841_v63 = vld [vmem:[#allocation8 + $0xa8] sm:$0xf]  ;;  %v4482_v0 = vld [vmem:[#allocation8 + $0xb4] sm:$0xf0]  ;;  %v3902_v32 = vor.u32 %v4495_v61, %v3899_v62  ;;  %v4057_v43 = vld [vmem:[#allocation8 + $0x260] sm:$0xf] }
 0x102   :  { %v4873_v60 = vadd.f32 %v1438_v55, %v1426_v54  ;;  %v3857_v54 = vld [vmem:[#allocation8 + $0xc8] sm:$0xf]  ;;  %v4486_v55 = vld [vmem:[#allocation8 + $0xd4] sm:$0xf0] }
 0x103   :  { %2610 = vmatpush.bf16.msrb.mxu0 %v3838_v18  ;;  %v1633_v14 = vadd.f32 %v4596_v52, %v1632_v6  ;;  %v3858_v59 = vor.u32 %v4486_v55, %v3857_v54  ;;  %v4466_v54 = vld [vmem:[#allocation8 + $0x34] sm:$0xf0]  ;;  %v3761_v62 = vld [vmem:[#allocation8 + $0x8] sm:$0xf] }
 0x104   :  { %v4877_v5 = vmul.f32 0.70710677, %v4873_v60  ;;  %2622 = vmatpush.bf16.msrb.mxu1 %v3982_v3 }
 0x105   :  { %v1637_v21 = vsel %vm1636_vm2, %v4596_v52, %v1633_v14  ;;  %v3825_v14 = vld [vmem:[#allocation8 + $0x88] sm:$0xf] }
 0x106   :  { %v1646_v11 = vmul.f32 %v4877_v5, %v4877_v5  ;;  %v1642_v25 = vsel %vm1639_vm3, %v1641_v16, %v1637_v21  ;;  %v4089_v21 = vld [vmem:[#allocation8 + $0x2a0] sm:$0xf] }
 0x107   :  { %2611 = vmatpush.bf16.msrb.mxu0 %v3822_v29  ;;  %v1427_v15 = vpop.f32.mrf.mxu2  ;;  %v1643_v29 = vmul.f32 %v1642_v25, %v1618_v19 }
 0x108   :  { %v4883_v17 = vmin.f32 %v1646_v11, 16.0  ;;  %v1440_v18 = vpop.f32.mrf.mxu3  ;;  %2623 = vmatpush.bf16.msrb.mxu1 %v3966_v13  ;;  %v3842_v11 = vor.u32 %v4482_v0, %v3841_v63  ;;  %v4478_v15 = vld [vmem:[#allocation8 + $0x94] sm:$0xf0]  ;;  %v4488_v0 = vld [vmem:[#allocation8 + $0xec] sm:$0xf] }
 0x109   :  { %v3747_v35 = vclamps-f32 %v1643_v29, 1.0  ;;  %v3886_v18 = vor.u32 %v4491_v4, %v3883_v12  ;;  %v3826_v37 = vor.u32 %v4478_v15, %v3825_v14  ;;  %v4462_v63 = vld [vmem:[#allocation8 + $0x14] sm:$0xf0]  ;;  %v4484_v15 = vld [vmem:[#allocation8 + $0xcc] sm:$0xf] }
 0x10a   :  { %v1648_v26 = vmul.f32 2.1237322e-06, %v4883_v17  ;;  %v1659_v28 = vmul.f32 3.8918573e-05, %v4883_v17  ;;  %v3762_v12 = vor.u32 %v4462_v63, %v3761_v62  ;;  %v3811_v63 = vld [vmem:[#allocation8 + $0x78] sm:$0xf0] }
 0x10b   :  { %2612 = vmatpush.bf16.msrb.mxu0 %v3806_v44  ;;  %v1766_v42 = vadd.f32 1.0, %v3747_v35  ;;  %v4073_v35 = vld [vmem:[#allocation8 + $0x280] sm:$0xf] }
 0x10c   :  { %v1649_v31 = vadd.f32 0.00028619796, %v1648_v26  ;;  %v1660_v34 = vadd.f32 0.001143296, %v1659_v28  ;;  %2624 = vmatpush.bf16.msrb.mxu1 %v3950_v27  ;;  %v3809_v26 = vld [vmem:[#allocation8 + $0x68] sm:$0xf]  ;;  %v4074_v22 = vor.u32 %v4541_v36, %v4073_v35 }
 0x10d   :  { %v1770_v46 = vmul.f32 %v1766_v42, %v1598_v41  ;;  %v4474_v28 = vld [vmem:[#allocation8 + $0x74] sm:$0xf0]  ;;  %v3793_v41 = vld [vmem:[#allocation8 + $0x48] sm:$0xf]  ;;  %v4480_v35 = vld [vmem:[#allocation8 + $0xac] sm:$0xf] }
 0x10e   :  { %v1650_v38 = vmul.f32 %v1649_v31, %v4883_v17  ;;  %v1661_v39 = vmul.f32 %v1660_v34, %v4883_v17  ;;  %v4470_v42 = vld [vmem:[#allocation8 + $0x54] sm:$0xf0]  ;;  %v3843_v36 = vld [vmem:[#allocation8 + $0xb8] sm:$0xf0] }
 0x10f   :  { %2613 = vmatpush.bf16.msrb.mxu0 %v3790_v57  ;;  %v4892_v52 = vpack.c.bf16 %v1770_v46, %v1770_v46  ;;  %v4553_v57 = vld [vmem:[#allocation8 + $0x2ec] sm:$0xf0]  ;;  %v3794_v48 = vor.u32 %v4470_v42, %v3793_v41 }
 0x110   :  { %v1651_v44 = vadd.f32 0.0036580483, %v1650_v38  ;;  %v1662_v45 = vadd.f32 0.014752088, %v1661_v39  ;;  %2625 = vmatpush.bf16.msrb.mxu1 %v3934_v40  ;;  %v4122_v2 = vor.u32 %v4553_v57, %v4121_v56  ;;  %v299_v38 = vperm.slane %v4838_v24, 2 }
 0x111   :  { %2564 = vmatmul.bf16.vlgmr.msra.gmra.mxu0 %v4892_v52  ;;  %v3810_v39 = vor.u32 %v4474_v28, %v3809_v26  ;;  %v4533_v56 = vld [vmem:[#allocation8 + $0x24c] sm:$0xf0]  ;;  %v1599_v26 = vmul.f32 0.5, %v4873_v60 }
 0x112   :  { %v1663_v49 = vmul.f32 %v1662_v45, %v4883_v17  ;;  %v1652_v53 = vmul.f32 %v1651_v44, %v4883_v17  ;;  %2582 = vmatpush.bf16.msra.mxu2 %v4122_v2  ;;  %v4537_v44 = vld [vmem:[#allocation8 + $0x26c] sm:$0xf0] }
 0x113   :  { %2614 = vmatpush.bf16.msrb.mxu0 %v3774_v8  ;;  %v4105_v8 = vld [vmem:[#allocation8 + $0x2c0] sm:$0xf]  ;;  %v4058_v46 = vor.u32 %v4537_v44, %v4057_v43  ;;  %v3846_v44 = vor.u32 %v4480_v35, %v3843_v36  ;;  %v4573_v36 = vld [vmem:[#allocation8 + $0x38c] sm:$0xf0] }
 0x114   :  { %v1664_v20 = vadd.f32 0.112945676, %v1663_v49  ;;  %2626 = vmatpush.bf16.msrb.mxu1 %v3918_v51  ;;  %v1653_v3 = vadd.f32 0.05243302, %v1652_v53  ;;  %v4106_v16 = vor.u32 %v4549_v9, %v4105_v8  ;;  %v3777_v49 = vld [vmem:[#allocation8 + $0x28] sm:$0xf] }
 0x115   :  { %v3778_v61 = vor.u32 %v4466_v54, %v3777_v49  ;;  %v4529_v8 = vld [vmem:[#allocation8 + $0x22c] sm:$0xf0]  ;;  %v4476_v49 = vld [vmem:[#allocation8 + $0x8c] sm:$0xf]  ;;  %v4091_v54 = vld [vmem:[#allocation8 + $0x2b0] sm:$0xf0] }
 0x116   :  { %v1665_v58 = vmul.f32 %v1664_v20, %v4883_v17  ;;  %v1654_v13 = vmul.f32 %v1653_v3, %v4883_v17  ;;  %2583 = vmatpush.bf16.msra.mxu2 %v4106_v16  ;;  %v4041_v20 = vld [vmem:[#allocation8 + $0x240] sm:$0xf]  ;;  %v3859_v16 = vld [vmem:[#allocation8 + $0xd8] sm:$0xf0] }
 0x117   :  { %2615 = vmatpush.bf16.msrb.mxu0 %v3758_v33  ;;  %v1451_v1 = vpop.f32.mrf.mxu0  ;;  %v4545_v33 = vld [vmem:[#allocation8 + $0x2ac] sm:$0xf0]  ;;  %v4201_v35 = vld [vmem:[#allocation8 + $0x380] sm:$0xf] }
 0x118   :  { %v1666_v6 = vadd.f32 0.4994258, %v1665_v58  ;;  %v4897_v7 = vpop.f32.mrf.mxu1  ;;  %2627 = vmatpush.bf16.msrb.mxu1 %v3902_v32  ;;  %v1655_v25 = vadd.f32 0.18741608, %v1654_v13  ;;  %v4090_v31 = vor.u32 %v4545_v33, %v4089_v21  ;;  %v1452_v47 = vadd.f32 %v1451_v1, %v299_v38  ;;  %v3875_v1 = vld [vmem:[#allocation8 + $0xf8] sm:$0xf0] }
 0x119   :  { %v3878_v14 = vor.u32 %v4488_v0, %v3875_v1 }
 0x11a   :  { %v1667_v10 = vmul.f32 %v1666_v6, %v4883_v17  ;;  %2584 = vmatpush.bf16.msra.mxu2 %v4090_v31  ;;  %v1656_v40 = vmul.f32 %v1655_v25, %v4883_v17  ;;  %v1465_v2 = vadd.f32 %v4897_v7, %v1452_v47  ;;  %v4025_v6 = vld [vmem:[#allocation8 + $0x220] sm:$0xf]  ;;  %v4123_v25 = vld [vmem:[#allocation8 + $0x2f0] sm:$0xf0]  ;;  %v4522_v31 = vld [vmem:[#allocation8 + $0x1f4] sm:$0xf0] }
 0x11b   :  { %2660 = vmatpush.bf16.msra.mxu0 %v3874_v50  ;;  %v4585_v47 = vld [vmem:[#allocation8 + $0x3ec] sm:$0xf0] }
 0x11c   :  { %v4901_v19 = vadd.f32 1.0, %v1667_v10  ;;  %2628 = vmatpush.bf16.msrb.mxu1 %v3886_v18  ;;  %v1657_v51 = vadd.f32 1.1283791, %v1656_v40  ;;  %v4009_v18 = vld [vmem:[#allocation8 + $0x200] sm:$0xf] }
 0x11d   :  { %v4107_v40 = vld [vmem:[#allocation8 + $0x2d0] sm:$0xf0] }
 0x11e   :  { %4597 = vrcp.f32 %v4901_v19  ;;  %2585 = vmatpush.bf16.msra.mxu2 %v4074_v22  ;;  %v1680_v55 = vand.u32 2147483648, %v4901_v19  ;;  %v1678_v58 = vand.u32 2147483647, %v4901_v19  ;;  %vm1674_vm5 = vweird.f32 %v4901_v19 }
 0x11f   :  { %2661 = vmatpush.bf16.msra.mxu0 %v3858_v59  ;;  %v4904_v23 = vpop.f32.mrf.mxu2  ;;  %v1453_v27 = vpop.f32.mrf.mxu0  ;;  %v4042_v59 = vor.u32 %v4533_v56, %v4041_v20  ;;  %v1658_v9 = vmul.f32 %v1657_v51, %v4877_v5  ;;  %v3969_v20 = vld [vmem:[#allocation8 + $0x1a8] sm:$0xf] }
 0x120   :  { %v4906_v29 = vpop.f32.mrf.mxu3  ;;  %v1466_v34 = vpop.f32.mrf.mxu1  ;;  %v1681_v32 = vor.u32 1.1754944e-38, %v1680_v55  ;;  %vm1679_vm7 = vcmp.eq.f32.partialorder %v1678_v58, 8.507059e+37  ;;  %v1478_v4 = vadd.f32 %v4904_v23, %v1465_v2  ;;  %v3862_v23 = vor.u32 %v4484_v15, %v3859_v16  ;;  %v4001_v27 = vld [vmem:[#allocation8 + $0x1e8] sm:$0xf]  ;;  %v4514_v58 = vld [vmem:[#allocation8 + $0x1b4] sm:$0xf0] }
 0x121   :  { %2616 = vmatmul.bf16.vlgmr.msrb.gmra.mxu0 %v4892_v52  ;;  %v4002_v42 = vor.u32 %v4522_v31, %v4001_v27  ;;  %v4581_v2 = vld [vmem:[#allocation8 + $0x3cc] sm:$0xf0]  ;;  %v4217_v15 = vld [vmem:[#allocation8 + $0x3a0] sm:$0xf] }
 0x122   :  { %2586 = vmatpush.bf16.msra.mxu2 %v4058_v46  ;;  %v1491_v5 = vadd.f32 %v4906_v29, %v1478_v4  ;;  %v4249_v46 = vld [vmem:[#allocation8 + $0x3e0] sm:$0xf]  ;;  %v4510_v4 = vld [vmem:[#allocation8 + $0x194] sm:$0xf0]  ;;  %v4577_v16 = vld [vmem:[#allocation8 + $0x3ac] sm:$0xf0] }
 0x123   :  { %2662 = vmatpush.bf16.msra.mxu0 %v3842_v11  ;;  %v4026_v11 = vor.u32 %v4529_v8, %v4025_v6  ;;  %v4250_v51 = vor.u32 %v4585_v47, %v4249_v46  ;;  %v4539_v6 = vld [vmem:[#allocation8 + $0x284] sm:$0xf]  ;;  %v4075_v8 = vld [vmem:[#allocation8 + $0x290] sm:$0xf0]  ;;  %v3921_v46 = vld [vmem:[#allocation8 + $0x148] sm:$0xf] }
 0x124   :  { %v4598_v30 = vpop.eup %4597  ;;  %v4502_v47 = vld [vmem:[#allocation8 + $0x154] sm:$0xf0] }
 0x125   :  { %v1670_v45 = vmul.f32 %v4598_v30, %v4901_v19  ;;  %vm1675_vm4 = vweird.f32 %v4598_v30  ;;  %v4525_v19 = vld [vmem:[#allocation8 + $0x20c] sm:$0xf0]  ;;  %2595 = vmatpush.bf16.msra.mxu3 %v4250_v51 }
 0x126   :  { %vm1676_vm6 = vmor %vm1674_vm5, %vm1675_vm4  ;;  %2587 = vmatpush.bf16.msra.mxu2 %v4042_v59  ;;  %v4010_v33 = vor.u32 %v4525_v19, %v4009_v18  ;;  %v4233_v59 = vld [vmem:[#allocation8 + $0x3c0] sm:$0xf] }
 0x127   :  { %2663 = vmatpush.bf16.msra.mxu0 %v3826_v37  ;;  %v1479_v50 = vpop.f32.mrf.mxu2  ;;  %v1671_v53 = vsub.f32 1.0, %v1670_v45  ;;  %v4551_v37 = vld [vmem:[#allocation8 + $0x2e4] sm:$0xf]  ;;  %v4518_v45 = vld [vmem:[#allocation8 + $0x1d4] sm:$0xf0]  ;;  %v4234_v0 = vor.u32 %v4581_v2, %v4233_v59 }
 0x128   :  { %v1492_v17 = vpop.f32.mrf.mxu3  ;;  %v4126_v34 = vor.u32 %v4551_v37, %v4123_v25  ;;  %v3827_v50 = vld [vmem:[#allocation8 + $0x98] sm:$0xf0]  ;;  %v4535_v37 = vld [vmem:[#allocation8 + $0x264] sm:$0xf]  ;;  %v4027_v59 = vld [vmem:[#allocation8 + $0x230] sm:$0xf0] }
 0x129   :  { %v1672_v57 = vmul.f32 %v4598_v30, %v1671_v53  ;;  %v4543_v53 = vld [vmem:[#allocation8 + $0x2a4] sm:$0xf]  ;;  %2596 = vmatpush.bf16.msra.mxu3 %v4234_v0 }
 0x12a   :  { %2588 = vmatpush.bf16.msra.mxu2 %v4026_v11  ;;  %v4094_v56 = vor.u32 %v4543_v53, %v4091_v54  ;;  %v4185_v53 = vld [vmem:[#allocation8 + $0x360] sm:$0xf]  ;;  %v4569_v54 = vld [vmem:[#allocation8 + $0x36c] sm:$0xf0] }
 0x12b   :  { %2664 = vmatpush.bf16.msra.mxu0 %v3810_v39  ;;  %v1673_v3 = vadd.f32 %v4598_v30, %v1672_v57  ;;  %v4547_v39 = vld [vmem:[#allocation8 + $0x2c4] sm:$0xf]  ;;  %v3830_v57 = vor.u32 %v4476_v49, %v3827_v50 }
 0x12c   :  { %v4110_v60 = vor.u32 %v4547_v39, %v4107_v40  ;;  %v4464_v40 = vld [vmem:[#allocation8 + $0x2c] sm:$0xf] }
 0x12d   :  { %v1677_v10 = vsel %vm1676_vm6, %v4598_v30, %v1673_v3  ;;  %v3985_v30 = vld [vmem:[#allocation8 + $0x1c8] sm:$0xf]  ;;  %v4472_v3 = vld [vmem:[#allocation8 + $0x6c] sm:$0xf] }
 0x12e   :  { %v1682_v7 = vsel %vm1679_vm7, %v1681_v32, %v1677_v10  ;;  %2589 = vmatpush.bf16.msra.mxu2 %v4010_v33  ;;  %v3986_v55 = vor.u32 %v4518_v45, %v3985_v30  ;;  %v3970_v10 = vor.u32 %v4514_v58, %v3969_v20  ;;  %v4218_v33 = vor.u32 %v4577_v16, %v4217_v15  ;;  %v4531_v30 = vld [vmem:[#allocation8 + $0x244] sm:$0xf]  ;;  %v4460_v20 = vld [vmem:[#allocation8 + $0xc] sm:$0xf]  ;;  %v3889_v16 = vld [vmem:[#allocation8 + $0x108] sm:$0xf] }
 0x12f   :  { %2665 = vmatpush.bf16.msra.mxu0 %v3794_v48  ;;  %v1683_v13 = vmul.f32 %v1682_v7, %v1658_v9  ;;  %v3953_v7 = vld [vmem:[#allocation8 + $0x188] sm:$0xf]  ;;  %v4527_v58 = vld [vmem:[#allocation8 + $0x224] sm:$0xf] }
 0x130   :  { %2597 = vmatpush.bf16.msra.mxu3 %v4218_v33  ;;  %v4030_v0 = vor.u32 %v4527_v58, %v4027_v59  ;;  %v4153_v33 = vld [vmem:[#allocation8 + $0x320] sm:$0xf] }
 0x131   :  { %v3748_v21 = vclamps-f32 %v1683_v13, 1.0  ;;  %v3814_v13 = vor.u32 %v4472_v3, %v3811_v63  ;;  %v3922_v3 = vor.u32 %v4502_v47, %v3921_v46  ;;  %v3905_v63 = vld [vmem:[#allocation8 + $0x128] sm:$0xf]  ;;  %v3971_v46 = vld [vmem:[#allocation8 + $0x1b8] sm:$0xf0] }
 0x132   :  { %2634 = vmatpush.bf16.msrb.mxu2 %v4126_v34  ;;  %v4506_v34 = vld [vmem:[#allocation8 + $0x174] sm:$0xf0]  ;;  %v4579_v47 = vld [vmem:[#allocation8 + $0x3c4] sm:$0xf] }
 0x133   :  { %2666 = vmatpush.bf16.msra.mxu0 %v3778_v61  ;;  %v1767_v28 = vadd.f32 1.0, %v3748_v21  ;;  %v3795_v21 = vld [vmem:[#allocation8 + $0x58] sm:$0xf0] }
 0x135   :  { %v1771_v22 = vmul.f32 %v1767_v28, %v1599_v26  ;;  %v3954_v28 = vor.u32 %v4510_v4, %v3953_v7 }
 0x136   :  { %2635 = vmatpush.bf16.msrb.mxu2 %v4110_v60  ;;  %v4043_v60 = vld [vmem:[#allocation8 + $0x250] sm:$0xf0] }
 0x137   :  { %2667 = vmatpush.bf16.msra.mxu0 %v3762_v12  ;;  %v1503_v38 = vpop.f32.mrf.mxu0  ;;  %v4921_v43 = vpack.c.bf16 %v1771_v22, %v1771_v22  ;;  %v4078_v12 = vor.u32 %v4539_v6, %v4075_v8  ;;  %v4046_v49 = vor.u32 %v4531_v30, %v4043_v60  ;;  %v4498_v8 = vld [vmem:[#allocation8 + $0x134] sm:$0xf0] }
 0x138   :  { %v1504_v29 = vadd.f32 %v1503_v38, %v1491_v5  ;;  %v1516_v41 = vpop.f32.mrf.mxu1  ;;  %v4059_v5 = vld [vmem:[#allocation8 + $0x270] sm:$0xf0]  ;;  %v3906_v15 = vor.u32 %v4498_v8, %v3905_v63  ;;  %v4575_v63 = vld [vmem:[#allocation8 + $0x3a4] sm:$0xf] }
 0x139   :  { %2577 = vmatmul.bf16.vlgmr.msra.gmra.mxu1 %v4921_v43  ;;  %v4062_v27 = vor.u32 %v4535_v37, %v4059_v5  ;;  %v4561_v37 = vld [vmem:[#allocation8 + $0x32c] sm:$0xf0] }
 0x13a   :  { %2668 = vmatmul.bf16.vlgmr.msra.gmra.mxu0 %v4892_v52  ;;  %v4923_v48 = vadd.f32 %v1516_v41, %v1504_v29  ;;  %2673 = vmatpush.bf16.msra.mxu1 %v4002_v42  ;;  %v3779_v29 = vld [vmem:[#allocation8 + $0x38] sm:$0xf0]  ;;  %v4202_v41 = vor.u32 %v4573_v36, %v4201_v35 }
 0x13b   :  { %2712 = vmatpush.bf16.msrb.mxu0 %v3878_v14  ;;  %2636 = vmatpush.bf16.msrb.mxu2 %v4094_v56  ;;  %v4468_v14 = vld [vmem:[#allocation8 + $0x4c] sm:$0xf]  ;;  %v3782_v51 = vor.u32 %v4464_v40, %v3779_v29  ;;  %v3763_v56 = vld [vmem:[#allocation8 + $0x18] sm:$0xf0] }
 0x13c   :  { %v4927_v17 = vmul.f32 0.70710677, %v4923_v48  ;;  %v3798_v31 = vor.u32 %v4468_v14, %v3795_v21  ;;  %2598 = vmatpush.bf16.msra.mxu3 %v4202_v41  ;;  %v3766_v6 = vor.u32 %v4460_v20, %v3763_v56  ;;  %v4516_v40 = vld [vmem:[#allocation8 + $0x1cc] sm:$0xf]  ;;  %v3987_v29 = vld [vmem:[#allocation8 + $0x1d8] sm:$0xf0] }
 0x13d   :  { %v3990_v60 = vor.u32 %v4516_v40, %v3987_v29  ;;  %v4496_v29 = vld [vmem:[#allocation8 + $0x12c] sm:$0xf] }
 0x13e   :  { %v1686_v61 = vmul.f32 %v4927_v17, %v4927_v17  ;;  %2674 = vmatpush.bf16.msra.mxu1 %v3986_v55 }
 0x13f   :  { %2713 = vmatpush.bf16.msrb.mxu0 %v3862_v23  ;;  %v4931_v62 = vpop.f32.mrf.mxu2  ;;  %v1505_v32 = vpop.f32.mrf.mxu0  ;;  %v3937_v23 = vld [vmem:[#allocation8 + $0x168] sm:$0xf]  ;;  %2637 = vmatpush.bf16.msrb.mxu2 %v4078_v12  ;;  %v4523_v12 = vld [vmem:[#allocation8 + $0x204] sm:$0xf] }
 0x140   :  { %v4933_v1 = vpop.f32.mrf.mxu3  ;;  %v4935_v9 = vmin.f32 %v1686_v61, 16.0  ;;  %v1518_v11 = vpop.f32.mrf.mxu1  ;;  %v3938_v45 = vor.u32 %v4506_v34, %v3937_v23  ;;  %v300_v61 = vperm.slane %v4838_v24, 3 }
 0x141   :  { %v4565_v11 = vld [vmem:[#allocation8 + $0x34c] sm:$0xf0] }
 0x142   :  { %v1688_v18 = vmul.f32 2.1237322e-06, %v4935_v9  ;;  %v1699_v19 = vmul.f32 3.8918573e-05, %v4935_v9  ;;  %2675 = vmatpush.bf16.msra.mxu1 %v3970_v10  ;;  %v4169_v10 = vld [vmem:[#allocation8 + $0x340] sm:$0xf]  ;;  %v1530_v24 = vadd.f32 %v4931_v62, %v300_v61 }
 0x143   :  { %2714 = vmatpush.bf16.msrb.mxu0 %v3846_v44  ;;  %2638 = vmatpush.bf16.msrb.mxu2 %v4062_v27  ;;  %v4170_v4 = vor.u32 %v4565_v11, %v4169_v10  ;;  %v3955_v61 = vld [vmem:[#allocation8 + $0x198] sm:$0xf0] }
 0x144   :  { %v1689_v25 = vadd.f32 0.00028619796, %v1688_v18  ;;  %v1700_v26 = vadd.f32 0.001143296, %v1699_v19  ;;  %v4494_v18 = vld [vmem:[#allocation8 + $0x114] sm:$0xf0]  ;;  %v1543_v62 = vadd.f32 %v4933_v1, %v1530_v24 }
 0x145   :  { %v4583_v1 = vld [vmem:[#allocation8 + $0x3e4] sm:$0xf] }
 0x146   :  { %v1690_v22 = vmul.f32 %v1689_v25, %v4935_v9  ;;  %v1701_v38 = vmul.f32 %v1700_v26, %v4935_v9  ;;  %2676 = vmatpush.bf16.msra.mxu1 %v3954_v28  ;;  %v4520_v25 = vld [vmem:[#allocation8 + $0x1ec] sm:$0xf]  ;;  %v4003_v26 = vld [vmem:[#allocation8 + $0x1f8] sm:$0xf0]  ;;  %v4154_v28 = vor.u32 %v4561_v37, %v4153_v33  ;;  %v4571_v24 = vld [vmem:[#allocation8 + $0x384] sm:$0xf] }
 0x147   :  { %2715 = vmatpush.bf16.msrb.mxu0 %v3830_v57  ;;  %v1531_v39 = vpop.f32.mrf.mxu2  ;;  %v4186_v57 = vor.u32 %v4569_v54, %v4185_v53  ;;  %2639 = vmatpush.bf16.msrb.mxu2 %v4046_v49  ;;  %v4006_v36 = vor.u32 %v4520_v25, %v4003_v26  ;;  %v4235_v49 = vld [vmem:[#allocation8 + $0x3d0] sm:$0xf0] }
 0x148   :  { %v1544_v42 = vpop.f32.mrf.mxu3  ;;  %v1702_v44 = vadd.f32 0.014752088, %v1701_v38  ;;  %v1691_v50 = vadd.f32 0.0036580483, %v1690_v22  ;;  %v4137_v22 = vld [vmem:[#allocation8 + $0x300] sm:$0xf] }
 0x149   :  { %2629 = vmatmul.bf16.vlgmr.msrb.gmra.mxu1 %v4921_v43  ;;  %2599 = vmatpush.bf16.msra.mxu3 %v4186_v57  ;;  %v4557_v38 = vld [vmem:[#allocation8 + $0x30c] sm:$0xf0]  ;;  %v4251_v42 = vld [vmem:[#allocation8 + $0x3f0] sm:$0xf0] }
 0x14a   :  { %v1703_v55 = vmul.f32 %v1702_v44, %v4935_v9  ;;  %2677 = vmatpush.bf16.msra.mxu1 %v3938_v45  ;;  %v1692_v32 = vmul.f32 %v1691_v50, %v4935_v9  ;;  %v4138_v41 = vor.u32 %v4557_v38, %v4137_v22  ;;  %v4254_v30 = vor.u32 %v4583_v1, %v4251_v42  ;;  %v4512_v44 = vld [vmem:[#allocation8 + $0x1ac] sm:$0xf]  ;;  %v3907_v42 = vld [vmem:[#allocation8 + $0x138] sm:$0xf0] }
 0x14b   :  { %2716 = vmatpush.bf16.msrb.mxu0 %v3814_v13  ;;  %v4011_v13 = vld [vmem:[#allocation8 + $0x210] sm:$0xf0]  ;;  %2640 = vmatpush.bf16.msrb.mxu2 %v4030_v0  ;;  %v3974_v59 = vor.u32 %v4512_v44, %v3971_v46  ;;  %v4554_v46 = vld [vmem:[#allocation8 + $0x2f4] sm:$0xf0] }
 0x14c   :  { %v1704_v2 = vadd.f32 0.112945676, %v1703_v55  ;;  %v1693_v19 = vadd.f32 0.05243302, %v1692_v32  ;;  %v4014_v21 = vor.u32 %v4523_v12, %v4011_v13  ;;  %v4219_v0 = vld [vmem:[#allocation8 + $0x3b0] sm:$0xf0] }
 0x14d   :  { %2600 = vmatpush.bf16.msra.mxu3 %v4170_v4  ;;  %v4504_v12 = vld [vmem:[#allocation8 + $0x16c] sm:$0xf] }
 0x14e   :  { %v1705_v7 = vmul.f32 %v1704_v2, %v4935_v9  ;;  %2678 = vmatpush.bf16.msra.mxu1 %v3922_v3  ;;  %v1694_v34 = vmul.f32 %v1693_v19, %v4935_v9  ;;  %v4508_v2 = vld [vmem:[#allocation8 + $0x18c] sm:$0xf] }
 0x14f   :  { %2717 = vmatpush.bf16.msrb.mxu0 %v3798_v31  ;;  %v3890_v31 = vor.u32 %v4494_v18, %v3889_v16  ;;  %2641 = vmatpush.bf16.msrb.mxu2 %v4014_v21 }
 0x150   :  { %v1706_v14 = vadd.f32 0.4994258, %v1705_v7 }
 0x151   :  { %2601 = vmatpush.bf16.msra.mxu3 %v4154_v28  ;;  %v4500_v28 = vld [vmem:[#allocation8 + $0x14c] sm:$0xf] }
 0x152   :  { %v1707_v5 = vmul.f32 %v1706_v14, %v4935_v9  ;;  %2679 = vmatpush.bf16.msra.mxu1 %v3906_v15  ;;  %v3939_v14 = vld [vmem:[#allocation8 + $0x178] sm:$0xf0]  ;;  %v4203_v15 = vld [vmem:[#allocation8 + $0x390] sm:$0xf0] }
 0x153   :  { %2718 = vmatpush.bf16.msrb.mxu0 %v3782_v51  ;;  %v4238_v51 = vor.u32 %v4579_v47, %v4235_v49  ;;  %v4206_v19 = vor.u32 %v4571_v24, %v4203_v15  ;;  %v3942_v26 = vor.u32 %v4504_v12, %v3939_v14 }
 0x154   :  { %v4948_v23 = vadd.f32 1.0, %v1707_v5 }
 0x155   :  { %2602 = vmatpush.bf16.msra.mxu3 %v4138_v41 }
 0x156   :  { %4599 = vrcp.f32 %v4948_v23  ;;  %2680 = vmatpush.bf16.msra.mxu1 %v3890_v31  ;;  %v1720_v8 = vand.u32 2147483648, %v4948_v23  ;;  %v1718_v4 = vand.u32 2147483647, %v4948_v23  ;;  %vm1714_vm9 = vweird.f32 %v4948_v23 }
 0x157   :  { %2719 = vmatpush.bf16.msrb.mxu0 %v3766_v6  ;;  %v1555_v27 = vpop.f32.mrf.mxu0  ;;  %v4222_v6 = vor.u32 %v4575_v63, %v4219_v0 }
 0x158   :  { %v1568_v35 = vpop.f32.mrf.mxu1  ;;  %v1556_v39 = vadd.f32 %v1555_v27, %v1543_v62  ;;  %v1721_v21 = vor.u32 1.1754944e-38, %v1720_v8  ;;  %vm1719_vm11 = vcmp.eq.f32.partialorder %v1718_v4, 8.507059e+37  ;;  %v3923_v62 = vld [vmem:[#allocation8 + $0x158] sm:$0xf0]  ;;  %v4546_v4 = vld [vmem:[#allocation8 + $0x2b4] sm:$0xf0] }
 0x159   :  { %2647 = vmatpush.bf16.msrb.mxu3 %v4254_v30  ;;  %2681 = vmatmul.bf16.vlgmr.msra.gmra.mxu1 %v4921_v43  ;;  %v4563_v30 = vld [vmem:[#allocation8 + $0x344] sm:$0xf] }
 0x15a   :  { %2720 = vmatmul.bf16.vlgmr.msrb.gmra.mxu0 %v4892_v52  ;;  %v1695_v52 = vadd.f32 0.18741608, %v1694_v34  ;;  %2725 = vmatpush.bf16.msrb.mxu1 %v4006_v36  ;;  %v1569_v45 = vadd.f32 %v1568_v35, %v1556_v39  ;;  %v4567_v34 = vld [vmem:[#allocation8 + $0x364] sm:$0xf]  ;;  %v4187_v36 = vld [vmem:[#allocation8 + $0x370] sm:$0xf0] }
 0x15b   :  { %v4190_v39 = vor.u32 %v4567_v34, %v4187_v36  ;;  %v4033_v36 = vld [vmem:[#allocation8 + $0x228] sm:$0xf] }
 0x15c   :  { %v4600_v53 = vpop.eup %4599  ;;  %v1696_v56 = vmul.f32 %v1695_v52, %v4935_v9  ;;  %v3958_v9 = vor.u32 %v4508_v2, %v3955_v61  ;;  %v4171_v52 = vld [vmem:[#allocation8 + $0x350] sm:$0xf0]  ;;  %v4550_v2 = vld [vmem:[#allocation8 + $0x2d4] sm:$0xf0] }
 0x15d   :  { %v1710_v57 = vmul.f32 %v4600_v53, %v4948_v23  ;;  %2648 = vmatpush.bf16.msrb.mxu3 %v4238_v51  ;;  %vm1715_vm8 = vweird.f32 %v4600_v53  ;;  %v4174_v47 = vor.u32 %v4563_v30, %v4171_v52  ;;  %v4552_v30 = vld [vmem:[#allocation8 + $0x2ec] sm:$0xf]  ;;  %v4131_v52 = vld [vmem:[#allocation8 + $0x2f8] sm:$0xf0] }
 0x15e   :  { %2726 = vmatpush.bf16.msrb.mxu1 %v3990_v60  ;;  %v1697_v11 = vadd.f32 1.1283791, %v1696_v56  ;;  %vm1716_vm10 = vmor %vm1714_vm9, %vm1715_vm8  ;;  %v1600_v60 = vmul.f32 0.5, %v4923_v48  ;;  %v3891_v56 = vld [vmem:[#allocation8 + $0x118] sm:$0xf0] }
 0x15f   :  { %v1581_v50 = vpop.f32.mrf.mxu2  ;;  %v1557_v20 = vpop.f32.mrf.mxu0  ;;  %v1711_v32 = vsub.f32 1.0, %v1710_v57  ;;  %v4559_v57 = vld [vmem:[#allocation8 + $0x324] sm:$0xf]  ;;  %v4113_v48 = vld [vmem:[#allocation8 + $0x2c8] sm:$0xf] }
 0x160   :  { %v1582_v54 = vadd.f32 %v1581_v50, %v1569_v45  ;;  %v1594_v55 = vpop.f32.mrf.mxu3  ;;  %v1570_v58 = vpop.f32.mrf.mxu1  ;;  %v1698_v5 = vmul.f32 %v1697_v11, %v4927_v17  ;;  %v3926_v17 = vor.u32 %v4500_v28, %v3923_v62  ;;  %v4129_v45 = vld [vmem:[#allocation8 + $0x2e8] sm:$0xf]  ;;  %v4114_v8 = vor.u32 %v4550_v2, %v4113_v48  ;;  %v4139_v11 = vld [vmem:[#allocation8 + $0x310] sm:$0xf0] }
 0x161   :  { %v1712_v7 = vmul.f32 %v4600_v53, %v1711_v32  ;;  %2649 = vmatpush.bf16.msrb.mxu3 %v4222_v6  ;;  %v4130_v20 = vor.u32 %v4554_v46, %v4129_v45  ;;  %v4155_v58 = vld [vmem:[#allocation8 + $0x330] sm:$0xf0]  ;;  %v4049_v62 = vld [vmem:[#allocation8 + $0x248] sm:$0xf] }
 0x162   :  { %v4957_v3 = vadd.f32 %v1594_v55, %v1582_v54  ;;  %2727 = vmatpush.bf16.msrb.mxu1 %v3974_v59  ;;  %v4492_v54 = vld [vmem:[#allocation8 + $0x10c] sm:$0xf]  ;;  %v4158_v61 = vor.u32 %v4559_v57, %v4155_v58  ;;  %v4586_v57 = vld [vmem:[#allocation8 + $0x3f4] sm:$0xf0] }
 0x163   :  { %v1713_v16 = vadd.f32 %v4600_v53, %v1712_v7  ;;  %v3894_v32 = vor.u32 %v4492_v54, %v3891_v56  ;;  %v4097_v7 = vld [vmem:[#allocation8 + $0x2a8] sm:$0xf]  ;;  %v4544_v58 = vld [vmem:[#allocation8 + $0x2ac] sm:$0xf] }
 0x164   :  { %v4961_v10 = vmul.f32 0.70710677, %v4957_v3  ;;  %v4098_v15 = vor.u32 %v4546_v4, %v4097_v7  ;;  %v1601_v54 = vmul.f32 0.5, %v4957_v3  ;;  %v4257_v56 = vld [vmem:[#allocation8 + $0x3e8] sm:$0xf] }
 0x165   :  { %v1717_v25 = vsel %vm1716_vm10, %v4600_v53, %v1713_v16  ;;  %2650 = vmatpush.bf16.msrb.mxu3 %v4206_v19  ;;  %v3910_v53 = vor.u32 %v4496_v29, %v3907_v42  ;;  %v4081_v16 = vld [vmem:[#allocation8 + $0x288] sm:$0xf]  ;;  %v4526_v42 = vld [vmem:[#allocation8 + $0x214] sm:$0xf0]  ;;  %v4258_v2 = vor.u32 %v4586_v57, %v4257_v56  ;;  %v4540_v3 = vld [vmem:[#allocation8 + $0x28c] sm:$0xf] }
 0x166   :  { %v1726_v13 = vmul.f32 %v4961_v10, %v4961_v10  ;;  %2728 = vmatpush.bf16.msrb.mxu1 %v3958_v9  ;;  %v1722_v27 = vsel %vm1719_vm11, %v1721_v21, %v1717_v25  ;;  %v4555_v9 = vld [vmem:[#allocation8 + $0x304] sm:$0xf]  ;;  %v4538_v25 = vld [vmem:[#allocation8 + $0x274] sm:$0xf0]  ;;  %v4225_v7 = vld [vmem:[#allocation8 + $0x3a8] sm:$0xf] }
 0x167   :  { %v1583_v18 = vpop.f32.mrf.mxu2  ;;  %v1723_v35 = vmul.f32 %v1722_v27, %v1698_v5  ;;  %v4142_v12 = vor.u32 %v4555_v9, %v4139_v11  ;;  %v4065_v5 = vld [vmem:[#allocation8 + $0x268] sm:$0xf]  ;;  %v4534_v27 = vld [vmem:[#allocation8 + $0x254] sm:$0xf0] }
 0x168   :  { %v4967_v33 = vmin.f32 %v1726_v13, 16.0  ;;  %v1596_v37 = vpop.f32.mrf.mxu3  ;;  %v4542_v18 = vld [vmem:[#allocation8 + $0x294] sm:$0xf0]  ;;  %v4066_v28 = vor.u32 %v4538_v25, %v4065_v5  ;;  %v4193_v25 = vld [vmem:[#allocation8 + $0x368] sm:$0xf] }
 0x169   :  { %v3749_v40 = vclamps-f32 %v1723_v35, 1.0  ;;  %2651 = vmatpush.bf16.msrb.mxu3 %v4190_v39  ;;  %v4082_v37 = vor.u32 %v4542_v18, %v4081_v16  ;;  %v4578_v4 = vld [vmem:[#allocation8 + $0x3b4] sm:$0xf0] }
 0x16a   :  { %v1728_v31 = vmul.f32 2.1237322e-06, %v4967_v33  ;;  %v1739_v23 = vmul.f32 3.8918573e-05, %v4967_v33  ;;  %2729 = vmatpush.bf16.msrb.mxu1 %v3942_v26  ;;  %v4574_v16 = vld [vmem:[#allocation8 + $0x394] sm:$0xf0] }
 0x16b   :  { %v1768_v44 = vadd.f32 1.0, %v3749_v40 }
 0x16c   :  { %v1729_v22 = vadd.f32 0.00028619796, %v1728_v31  ;;  %v1740_v38 = vadd.f32 0.001143296, %v1739_v23 }
 0x16d   :  { %v1772_v50 = vmul.f32 %v1768_v44, %v1600_v60  ;;  %2652 = vmatpush.bf16.msrb.mxu3 %v4174_v47 }
 0x16e   :  { %v1730_v41 = vmul.f32 %v1729_v22, %v4967_v33  ;;  %v1741_v1 = vmul.f32 %v1740_v38, %v4967_v33  ;;  %2730 = vmatpush.bf16.msrb.mxu1 %v3926_v17  ;;  %v4530_v22 = vld [vmem:[#allocation8 + $0x234] sm:$0xf0] }
 0x16f   :  { %v4976_v59 = vpack.c.bf16 %v1772_v50, %v1772_v50  ;;  %v4034_v29 = vor.u32 %v4530_v22, %v4033_v36  ;;  %v4548_v50 = vld [vmem:[#allocation8 + $0x2cc] sm:$0xf]  ;;  %v4019_v36 = vld [vmem:[#allocation8 + $0x218] sm:$0xf0] }
 0x170   :  { %v1742_v49 = vadd.f32 0.014752088, %v1741_v1  ;;  %v1731_v51 = vadd.f32 0.0036580483, %v1730_v41  ;;  %v4017_v1 = vld [vmem:[#allocation8 + $0x208] sm:$0xf] }
 0x171   :  { %2590 = vmatmul.bf16.vlgmr.msra.gmra.mxu2 %v4976_v59  ;;  %2653 = vmatpush.bf16.msrb.mxu3 %v4158_v61  ;;  %v4018_v46 = vor.u32 %v4526_v42, %v4017_v1  ;;  %v4584_v42 = vld [vmem:[#allocation8 + $0x3ec] sm:$0xf] }
 0x172   :  { %v1743_v55 = vmul.f32 %v1742_v49, %v4967_v33  ;;  %v1732_v0 = vmul.f32 %v1731_v51, %v4967_v33  ;;  %2731 = vmatpush.bf16.msrb.mxu1 %v3910_v53  ;;  %2686 = vmatpush.bf16.msra.mxu2 %v4130_v20  ;;  %v4134_v49 = vor.u32 %v4552_v30, %v4131_v52  ;;  %v4115_v51 = vld [vmem:[#allocation8 + $0x2d8] sm:$0xf0] }
 0x173   :  { %v4118_v20 = vor.u32 %v4548_v50, %v4115_v51  ;;  %v4576_v50 = vld [vmem:[#allocation8 + $0x3ac] sm:$0xf]  ;;  %v4227_v51 = vld [vmem:[#allocation8 + $0x3b8] sm:$0xf0] }
 0x174   :  { %v1744_v63 = vadd.f32 0.112945676, %v1743_v55  ;;  %v1733_v14 = vadd.f32 0.05243302, %v1732_v0  ;;  %v4241_v0 = vld [vmem:[#allocation8 + $0x3c8] sm:$0xf] }
 0x175   :  { %2654 = vmatpush.bf16.msrb.mxu3 %v4142_v12  ;;  %v4536_v12 = vld [vmem:[#allocation8 + $0x26c] sm:$0xf] }
 0x176   :  { %v1745_v6 = vmul.f32 %v1744_v63, %v4967_v33  ;;  %2732 = vmatpush.bf16.msrb.mxu1 %v3894_v32  ;;  %2687 = vmatpush.bf16.msra.mxu2 %v4114_v8  ;;  %v1734_v21 = vmul.f32 %v1733_v14, %v4967_v33  ;;  %v4582_v32 = vld [vmem:[#allocation8 + $0x3d4] sm:$0xf0]  ;;  %v4083_v8 = vld [vmem:[#allocation8 + $0x298] sm:$0xf0]  ;;  %v4226_v14 = vor.u32 %v4578_v4, %v4225_v7 }
 0x177   :  { %v4242_v9 = vor.u32 %v4582_v32, %v4241_v0  ;;  %v4086_v11 = vor.u32 %v4540_v3, %v4083_v8  ;;  %v4564_v0 = vld [vmem:[#allocation8 + $0x34c] sm:$0xf]  ;;  %v4179_v32 = vld [vmem:[#allocation8 + $0x358] sm:$0xf0] }
 0x178   :  { %v1746_v13 = vadd.f32 0.4994258, %v1745_v6  ;;  %v1735_v26 = vadd.f32 0.18741608, %v1734_v21  ;;  %v4051_v21 = vld [vmem:[#allocation8 + $0x258] sm:$0xf0]  ;;  %v4182_v8 = vor.u32 %v4564_v0, %v4179_v32 }
 0x179   :  { %2733 = vmatmul.bf16.vlgmr.msrb.gmra.mxu1 %v4921_v43  ;;  %v4050_v43 = vor.u32 %v4534_v27, %v4049_v62  ;;  %v4035_v62 = vld [vmem:[#allocation8 + $0x238] sm:$0xf0] }
 0x17a   :  { %v1747_v24 = vmul.f32 %v1746_v13, %v4967_v33  ;;  %2688 = vmatpush.bf16.msra.mxu2 %v4098_v15  ;;  %v1736_v23 = vmul.f32 %v1735_v26, %v4967_v33  ;;  %v4067_v13 = vld [vmem:[#allocation8 + $0x278] sm:$0xf0]  ;;  %v4209_v15 = vld [vmem:[#allocation8 + $0x388] sm:$0xf]  ;;  %v4570_v26 = vld [vmem:[#allocation8 + $0x374] sm:$0xf0] }
 0x17b   :  { %v4194_v27 = vor.u32 %v4570_v26, %v4193_v25 }
 0x17c   :  { %v1748_v19 = vadd.f32 1.0, %v1747_v24  ;;  %v1737_v39 = vadd.f32 1.1283791, %v1736_v23  ;;  %v4070_v24 = vor.u32 %v4536_v12, %v4067_v13  ;;  %v4177_v23 = vld [vmem:[#allocation8 + $0x348] sm:$0xf] }
 0x17d   :  { %v4556_v12 = vld [vmem:[#allocation8 + $0x30c] sm:$0xf]  ;;  %v4147_v13 = vld [vmem:[#allocation8 + $0x318] sm:$0xf0] }
 0x17e   :  { %4601 = vrcp.f32 %v1748_v19  ;;  %2689 = vmatpush.bf16.msra.mxu2 %v4082_v37  ;;  %v1760_v38 = vand.u32 2147483648, %v1748_v19  ;;  %v1758_v17 = vand.u32 2147483647, %v1748_v19  ;;  %vm1754_vm13 = vweird.f32 %v1748_v19 }
 0x17f   :  { %v1738_v60 = vmul.f32 %v1737_v39, %v4961_v10  ;;  %v4099_v10 = vld [vmem:[#allocation8 + $0x2b8] sm:$0xf0]  ;;  %v4210_v37 = vor.u32 %v4574_v16, %v4209_v15  ;;  %v4161_v39 = vld [vmem:[#allocation8 + $0x328] sm:$0xf] }
 0x180   :  { %v1761_v33 = vor.u32 1.1754944e-38, %v1760_v38  ;;  %vm1759_vm15 = vcmp.eq.f32.partialorder %v1758_v17, 8.507059e+37  ;;  %v4102_v63 = vor.u32 %v4544_v58, %v4099_v10  ;;  %v4568_v10 = vld [vmem:[#allocation8 + $0x36c] sm:$0xf] }
 0x181   :  { %2642 = vmatmul.bf16.vlgmr.msrb.gmra.mxu2 %v4976_v59 }
 0x182   :  { %2690 = vmatpush.bf16.msra.mxu2 %v4066_v28  ;;  %v4528_v28 = vld [vmem:[#allocation8 + $0x22c] sm:$0xf] }
 0x184   :  { %v4602_v31 = vpop.eup %4601 }
 0x185   :  { %v1750_v34 = vmul.f32 %v4602_v31, %v1748_v19  ;;  %vm1755_vm12 = vweird.f32 %v4602_v31  ;;  %v4532_v19 = vld [vmem:[#allocation8 + $0x24c] sm:$0xf] }
 0x186   :  { %2691 = vmatpush.bf16.msra.mxu2 %v4050_v43  ;;  %vm1756_vm14 = vmor %vm1754_vm13, %vm1755_vm12  ;;  %v4054_v5 = vor.u32 %v4532_v19, %v4051_v21 }
 0x187   :  { %v1751_v35 = vsub.f32 1.0, %v1750_v34  ;;  %v4566_v34 = vld [vmem:[#allocation8 + $0x354] sm:$0xf0] }
 0x188   :  { %v4178_v22 = vor.u32 %v4566_v34, %v4177_v23 }
 0x189   :  { %v1752_v40 = vmul.f32 %v4602_v31, %v1751_v35  ;;  %v4524_v35 = vld [vmem:[#allocation8 + $0x20c] sm:$0xf] }
 0x18a   :  { %2692 = vmatpush.bf16.msra.mxu2 %v4034_v29  ;;  %v4022_v38 = vor.u32 %v4524_v35, %v4019_v36  ;;  %v4145_v29 = vld [vmem:[#allocation8 + $0x308] sm:$0xf] }
 0x18b   :  { %v1753_v41 = vadd.f32 %v4602_v31, %v1752_v40  ;;  %v4562_v40 = vld [vmem:[#allocation8 + $0x334] sm:$0xf0] }
 0x18c   :  { %v4162_v17 = vor.u32 %v4562_v40, %v4161_v39 }
 0x18d   :  { %v1757_v44 = vsel %vm1756_vm14, %v4602_v31, %v1753_v41  ;;  %v4038_v31 = vor.u32 %v4528_v28, %v4035_v62  ;;  %v4558_v41 = vld [vmem:[#allocation8 + $0x314] sm:$0xf0] }
 0x18e   :  { %v1762_v45 = vsel %vm1759_vm15, %v1761_v33, %v1757_v44  ;;  %2693 = vmatpush.bf16.msra.mxu2 %v4018_v46  ;;  %v4991_v6 = vpop.f32.mrf.mxu0  ;;  %v4259_v33 = vld [vmem:[#allocation8 + $0x3f8] sm:$0xf0]  ;;  %v4146_v30 = vor.u32 %v4558_v41, %v4145_v29  ;;  %v4580_v44 = vld [vmem:[#allocation8 + $0x3cc] sm:$0xf] }
 0x18f   :  { %v1763_v47 = vmul.f32 %v1762_v45, %v1738_v60  ;;  %v4262_v52 = vor.u32 %v4584_v42, %v4259_v33  ;;  %v1906_v60 = vld [vmem:[%s5081_s4] sm:$0xf]  ;;  %v4243_v45 = vld [vmem:[#allocation8 + $0x3d8] sm:$0xf0] }
 0x190   :  { %v1908_v46 = vperm.slane %v1906_v60, 0  ;;  %v1909_v3 = vperm.slane %v1906_v60, 1  ;;  %v1911_v26 = vperm.slane %v1906_v60, 3 }
 0x191   :  { %v3750_v53 = vclamps-f32 %v1763_v47, 1.0  ;;  %2694 = vmatmul.bf16.vlgmr.msra.gmra.mxu2 %v4976_v59  ;;  %v4246_v47 = vor.u32 %v4580_v44, %v4243_v45 }
 0x192   :  { %2738 = vmatpush.bf16.msrb.mxu2 %v4134_v49 }
 0x193   :  { %v1769_v55 = vadd.f32 1.0, %v3750_v53  ;;  %v2566_v53 = vadd.f32 %v4991_v6, %v1908_v46  ;;  %v4560_v6 = vld [vmem:[#allocation8 + $0x32c] sm:$0xf] }
 0x195   :  { %v1773_v48 = vmul.f32 %v1769_v55, %v1601_v54  ;;  %v4572_v55 = vld [vmem:[#allocation8 + $0x38c] sm:$0xf] }
 0x196   :  { %2739 = vmatpush.bf16.msrb.mxu2 %v4118_v20  ;;  %v2567_v18 = vpop.f32.mrf.mxu0  ;;  %v4211_v20 = vld [vmem:[#allocation8 + $0x398] sm:$0xf0] }
 0x197   :  { %v4989_v61 = vpack.c.bf16 %v1773_v48, %v1773_v48  ;;  %v4214_v57 = vor.u32 %v4572_v55, %v4211_v20  ;;  %v4195_v48 = vld [vmem:[#allocation8 + $0x378] sm:$0xf0]  ;;  %v1910_v18 = vperm.slane %v1906_v60, 2 }
 0x199   :  { %2603 = vmatmul.bf16.vlgmr.msra.gmra.mxu3 %v4989_v61 }
 0x19a   :  { %2699 = vmatpush.bf16.msra.mxu3 %v4258_v2  ;;  %2740 = vmatpush.bf16.msrb.mxu2 %v4102_v63  ;;  %v4198_v2 = vor.u32 %v4568_v10, %v4195_v48 }
 0x19e   :  { %2700 = vmatpush.bf16.msra.mxu3 %v4242_v9  ;;  %2741 = vmatpush.bf16.msrb.mxu2 %v4086_v11  ;;  %v2617_v43 = vpop.f32.mrf.mxu0  ;;  %v4163_v9 = vld [vmem:[#allocation8 + $0x338] sm:$0xf0] }
 0x19f   :  { %v2618_v11 = vadd.f32 %v2617_v43, %v1909_v3  ;;  %v4166_v7 = vor.u32 %v4560_v6, %v4163_v9 }
 0x1a2   :  { %2701 = vmatpush.bf16.msra.mxu3 %v4226_v14  ;;  %2742 = vmatpush.bf16.msrb.mxu2 %v4070_v24  ;;  %v4150_v24 = vor.u32 %v4556_v12, %v4147_v13 }
 0x1a6   :  { %2702 = vmatpush.bf16.msra.mxu3 %v4210_v37  ;;  %2743 = vmatpush.bf16.msrb.mxu2 %v4054_v5  ;;  %v2619_v1 = vpop.f32.mrf.mxu0 }
 0x1a9   :  { %2655 = vmatmul.bf16.vlgmr.msrb.gmra.mxu3 %v4989_v61 }
 0x1aa   :  { %2703 = vmatpush.bf16.msra.mxu3 %v4194_v27  ;;  %2744 = vmatpush.bf16.msrb.mxu2 %v4038_v31 }
 0x1ae   :  { %2704 = vmatpush.bf16.msra.mxu3 %v4178_v22  ;;  %2745 = vmatpush.bf16.msrb.mxu2 %v4022_v38 }
 0x1b1   :  { %2746 = vmatmul.bf16.vlgmr.msrb.gmra.mxu2 %v4976_v59  ;;  %v4230_v59 = vor.u32 %v4576_v50, %v4227_v51 }
 0x1b2   :  { %2705 = vmatpush.bf16.msra.mxu3 %v4162_v17 }
 0x1b6   :  { %2706 = vmatpush.bf16.msra.mxu3 %v4146_v30  ;;  %v2578_v54 = vpop.f32.mrf.mxu1 }
 0x1b7   :  { %v2669_v49 = vpop.f32.mrf.mxu0  ;;  %v2579_v56 = vadd.f32 %v2578_v54, %v2566_v53 }
 0x1b8   :  { %v2670_v19 = vadd.f32 %v2669_v49, %v1910_v18 }
 0x1b9   :  { %2707 = vmatmul.bf16.vlgmr.msra.gmra.mxu3 %v4989_v61 }
 0x1ba   :  { %2751 = vmatpush.bf16.msrb.mxu3 %v4262_v52 }
 0x1be   :  { %2752 = vmatpush.bf16.msrb.mxu3 %v4246_v47  ;;  %v2580_v63 = vpop.f32.mrf.mxu1 }
 0x1bf   :  { %v2671_v58 = vpop.f32.mrf.mxu0 }
 0x1c2   :  { %2753 = vmatpush.bf16.msrb.mxu3 %v4230_v59 }
 0x1c6   :  { %2754 = vmatpush.bf16.msrb.mxu3 %v4214_v57  ;;  %v2630_v4 = vpop.f32.mrf.mxu1 }
 0x1c7   :  { %v2631_v14 = vadd.f32 %v2630_v4, %v2618_v11 }
 0x1ca   :  { %2755 = vmatpush.bf16.msrb.mxu3 %v4198_v2 }
 0x1ce   :  { %2756 = vmatpush.bf16.msrb.mxu3 %v4182_v8  ;;  %v2632_v15 = vpop.f32.mrf.mxu1 }
 0x1d2   :  { %2757 = vmatpush.bf16.msrb.mxu3 %v4166_v7 }
 0x1d6   :  { %2758 = vmatpush.bf16.msrb.mxu3 %v4150_v24  ;;  %v2682_v21 = vpop.f32.mrf.mxu1 }
 0x1d7   :  { %v2721_v16 = vpop.f32.mrf.mxu0  ;;  %v2683_v37 = vadd.f32 %v2682_v21, %v2670_v19 }
 0x1d8   :  { %v2722_v28 = vadd.f32 %v2721_v16, %v1911_v26 }
 0x1d9   :  { %2759 = vmatmul.bf16.vlgmr.msrb.gmra.mxu3 %v4989_v61 }
 0x1de   :  { %v2684_v25 = vpop.f32.mrf.mxu1 }
 0x1df   :  { %v2723_v5 = vpop.f32.mrf.mxu0 }
 0x1f4   :  { %v2591_v62 = vpop.f32.mrf.mxu2 }
 0x1f5   :  { %v2592_v27 = vadd.f32 %v2591_v62, %v2579_v56 }
 0x1f6   :  { %v2734_v31 = vpop.f32.mrf.mxu1 }
 0x1f7   :  { %v5002_v23 = vadd.f32 %v2734_v31, %v2722_v28 }
 0x1fc   :  { %v2593_v34 = vpop.f32.mrf.mxu2 }
 0x1fe   :  { %v2736_v43 = vpop.f32.mrf.mxu1 }
 0x204   :  { %v2643_v35 = vpop.f32.mrf.mxu2 }
 0x205   :  { %v2644_v36 = vadd.f32 %v2643_v35, %v2631_v14 }
 0x20c   :  { %v2645_v22 = vpop.f32.mrf.mxu2 }
 0x214   :  { %v2695_v38 = vpop.f32.mrf.mxu2 }
 0x215   :  { %v2696_v6 = vadd.f32 %v2695_v38, %v2683_v37 }
 0x21c   :  { %v2604_v61 = vpop.f32.mrf.mxu3  ;;  %v2697_v17 = vpop.f32.mrf.mxu2 }
 0x21d   :  { %v5004_v39 = vadd.f32 %v2604_v61, %v2592_v27 }
 0x21f   :  { %v5007_v40 = vmul.f32 0.70710677, %v5004_v39 }
 0x221   :  { %v2772_v29 = vmul.f32 %v5007_v40, %v5007_v40 }
 0x223   :  { %v2773_v41 = vmin.f32 %v2772_v29, 16.0 }
 0x224   :  { %v2606_v1 = vpop.f32.mrf.mxu3 }
 0x225   :  { %v2785_v42 = vmul.f32 3.8918573e-05, %v2773_v41  ;;  %v2774_v30 = vmul.f32 2.1237322e-06, %v2773_v41 }
 0x227   :  { %v2786_v33 = vadd.f32 0.001143296, %v2785_v42  ;;  %v2775_v44 = vadd.f32 0.00028619796, %v2774_v30 }
 0x229   :  { %v2787_v52 = vmul.f32 %v2786_v33, %v2773_v41  ;;  %v2776_v50 = vmul.f32 %v2775_v44, %v2773_v41 }
 0x22b   :  { %v2788_v60 = vadd.f32 0.014752088, %v2787_v52  ;;  %v2777_v55 = vadd.f32 0.0036580483, %v2776_v50 }
 0x22c   :  { %v2656_v45 = vpop.f32.mrf.mxu3 }
 0x22d   :  { %v2789_v46 = vmul.f32 %v2788_v60, %v2773_v41  ;;  %v5011_v47 = vadd.f32 %v2656_v45, %v2644_v36  ;;  %v2778_v63 = vmul.f32 %v2777_v55, %v2773_v41 }
 0x22f   :  { %v2790_v49 = vadd.f32 0.112945676, %v2789_v46  ;;  %v5014_v51 = vmul.f32 0.70710677, %v5011_v47  ;;  %v2779_v9 = vadd.f32 0.05243302, %v2778_v63 }
 0x231   :  { %v2791_v53 = vmul.f32 %v2790_v49, %v2773_v41  ;;  %v2812_v59 = vmul.f32 %v5014_v51, %v5014_v51  ;;  %v2780_v16 = vmul.f32 %v2779_v9, %v2773_v41 }
 0x233   :  { %v2792_v54 = vadd.f32 0.4994258, %v2791_v53  ;;  %v5018_v20 = vmin.f32 %v2812_v59, 16.0  ;;  %v2781_v28 = vadd.f32 0.18741608, %v2780_v16 }
 0x234   :  { %v2658_v56 = vpop.f32.mrf.mxu3  ;;  %v5020_v58 = vpop.f32.mrf.mxu2 }
 0x235   :  { %v2793_v57 = vmul.f32 %v2792_v54, %v2773_v41  ;;  %v2814_v10 = vmul.f32 2.1237322e-06, %v5018_v20  ;;  %v2825_v48 = vmul.f32 3.8918573e-05, %v5018_v20  ;;  %v2782_v61 = vmul.f32 %v2781_v28, %v2773_v41 }
 0x237   :  { %v2794_v2 = vadd.f32 1.0, %v2793_v57  ;;  %v2815_v0 = vadd.f32 0.00028619796, %v2814_v10  ;;  %v2826_v32 = vadd.f32 0.001143296, %v2825_v48 }
 0x238   :  { %v2783_v60 = vadd.f32 1.1283791, %v2782_v61 }
 0x239   :  { %4603 = vrcp.f32 %v2794_v2  ;;  %v2816_v3 = vmul.f32 %v2815_v0, %v5018_v20  ;;  %v2827_v8 = vmul.f32 %v2826_v32, %v5018_v20  ;;  %v2806_v1 = vand.u32 2147483648, %v2794_v2  ;;  %v2940_v0 = vld [vmem:[#allocation10] sm:$0xf] }
 0x23a   :  { %vm2800_vm1 = vweird.f32 %v2794_v2  ;;  %v2804_v52 = vand.u32 2147483647, %v2794_v2  ;;  %v2784_v54 = vmul.f32 %v2783_v60, %v5007_v40 }
 0x23b   :  { %v2828_v11 = vadd.f32 0.014752088, %v2827_v8  ;;  %v2817_v4 = vadd.f32 0.0036580483, %v2816_v3  ;;  %v2807_v49 = vor.u32 1.1754944e-38, %v2806_v1 }
 0x23c   :  { %v2708_v7 = vpop.f32.mrf.mxu3  ;;  %v2749_v13 = vpop.f32.mrf.mxu2  ;;  %vm2805_vm3 = vcmp.eq.f32.partialorder %v2804_v52, 8.507059e+37 }
 0x23d   :  { %v5026_v12 = vadd.f32 %v2708_v7, %v2696_v6  ;;  %v2829_v14 = vmul.f32 %v2828_v11, %v5018_v20  ;;  %v2818_v21 = vmul.f32 %v2817_v4, %v5018_v20  ;;  %v5050_v4 = vunpack.c.l.bf16 %v2940_v0 }
 0x23f   :  { %v4604_v24 = vpop.eup %4603  ;;  %v5030_v15 = vmul.f32 0.70710677, %v5026_v12  ;;  %v2830_v19 = vadd.f32 0.112945676, %v2829_v14  ;;  %v2819_v34 = vadd.f32 0.05243302, %v2818_v21 }
 0x240   :  { %v2796_v18 = vmul.f32 %v4604_v24, %v2794_v2  ;;  %vm2801_vm0 = vweird.f32 %v4604_v24 }
 0x241   :  { %v2852_v37 = vmul.f32 %v5030_v15, %v5030_v15  ;;  %v2831_v25 = vmul.f32 %v2830_v19, %v5018_v20  ;;  %v2820_v42 = vmul.f32 %v2819_v34, %v5018_v20  ;;  %vm2802_vm2 = vmor %vm2800_vm1, %vm2801_vm0  ;;  %v2748_v19 = vadd.f32 %v5020_v58, %v5002_v23 }
 0x242   :  { %v2797_v5 = vsub.f32 1.0, %v2796_v18  ;;  %v2765_v58 = vmul.f32 0.5, %v5011_v47  ;;  %vm2970_vm0 = vcmask 7168  }
 0x243   :  { %v5036_v26 = vmin.f32 %v2852_v37, 16.0  ;;  %v2832_v27 = vadd.f32 0.4994258, %v2831_v25  ;;  %v2821_v41 = vadd.f32 0.18741608, %v2820_v42  ;;  %v2943_v25 = vperm.slane %v5050_v4, 0 }
 0x244   :  { %v2798_v62 = vmul.f32 %v4604_v24, %v2797_v5  ;;  %v2710_v31 = vpop.f32.mrf.mxu3 }
 0x245   :  { %v2854_v43 = vmul.f32 2.1237322e-06, %v5036_v26  ;;  %v2865_v35 = vmul.f32 3.8918573e-05, %v5036_v26  ;;  %v2833_v36 = vmul.f32 %v2832_v27, %v5018_v20  ;;  %v2822_v57 = vmul.f32 %v2821_v41, %v5018_v20 }
 0x246   :  { %v2799_v17 = vadd.f32 %v4604_v24, %v2798_v62  ;;  %v2944_v27 = vperm.slane %v5050_v4, 2  ;;  %v2764_v31 = vmul.f32 0.5, %v5004_v39  ;;  %v2951_v23 = vperm.slane %v2943_v25, 0 }
 0x247   :  { %v2855_v22 = vadd.f32 0.00028619796, %v2854_v43  ;;  %v2866_v38 = vadd.f32 0.001143296, %v2865_v35  ;;  %v2834_v29 = vadd.f32 1.0, %v2833_v36 }
 0x248   :  { %v2803_v44 = vsel %vm2802_vm2, %v4604_v24, %v2799_v17  ;;  %v2823_v6 = vadd.f32 1.1283791, %v2822_v57 }
 0x249   :  { %v2856_v33 = vmul.f32 %v2855_v22, %v5036_v26  ;;  %v2867_v30 = vmul.f32 %v2866_v38, %v5036_v26  ;;  %4605 = vrcp.f32 %v2834_v29  ;;  %v2808_v53 = vsel %vm2805_vm3, %v2807_v49, %v2803_v44 }
 0x24a   :  { %v2809_v48 = vmul.f32 %v2808_v53, %v2784_v54  ;;  %v2846_v32 = vand.u32 2147483648, %v2834_v29  ;;  %v2844_v11 = vand.u32 2147483647, %v2834_v29  ;;  %vm2840_vm5 = vweird.f32 %v2834_v29 }
 0x24b   :  { %v2857_v45 = vadd.f32 0.0036580483, %v2856_v33  ;;  %v2868_v46 = vadd.f32 0.014752088, %v2867_v30  ;;  %v2824_v16 = vmul.f32 %v2823_v6, %v5014_v51  ;;  %v2952_v38 = vperm.slane %v2944_v27, 0 }
 0x24c   :  { %v4263_v7 = vclamps-f32 %v2809_v48, 1.0  ;;  %v2847_v20 = vor.u32 1.1754944e-38, %v2846_v32  ;;  %vm2845_vm7 = vcmp.eq.f32.partialorder %v2844_v11, 8.507059e+37  ;;  %v2945_v32 = vperm.slane %v5050_v4, 4 }
 0x24d   :  { %v2869_v50 = vmul.f32 %v2868_v46, %v5036_v26  ;;  %v2858_v55 = vmul.f32 %v2857_v45, %v5036_v26 }
 0x24e   :  { %v2932_v37 = vadd.f32 1.0, %v4263_v7 }
 0x24f   :  { %v4606_v59 = vpop.eup %4605  ;;  %v2870_v56 = vadd.f32 0.112945676, %v2869_v50  ;;  %v2859_v3 = vadd.f32 0.05243302, %v2858_v55 }
 0x250   :  { %v2836_v10 = vmul.f32 %v4606_v59, %v2834_v29  ;;  %vm2841_vm4 = vweird.f32 %v4606_v59  ;;  %v2936_v35 = vmul.f32 %v2932_v37, %v2764_v31 }
 0x251   :  { %v2871_v2 = vmul.f32 %v2870_v56, %v5036_v26  ;;  %vm2842_vm6 = vmor %vm2840_vm5, %vm2841_vm4  ;;  %v2860_v14 = vmul.f32 %v2859_v3, %v5036_v26 }
 0x252   :  { %v2837_v63 = vsub.f32 1.0, %v2836_v10  ;;  %v2955_v33 = vmul.f32 %v2951_v23, %v2936_v35 }
 0x253   :  { %v2872_v8 = vadd.f32 0.4994258, %v2871_v2  ;;  %v2861_v34 = vadd.f32 0.18741608, %v2860_v14 }
 0x254   :  { %v2838_v9 = vmul.f32 %v4606_v59, %v2837_v63 }
 0x255   :  { %v2873_v40 = vmul.f32 %v2872_v8, %v5036_v26  ;;  %v2862_v17 = vmul.f32 %v2861_v34, %v5036_v26 }
 0x256   :  { %v2839_v13 = vadd.f32 %v4606_v59, %v2838_v9  ;;  %v2766_v9 = vmul.f32 0.5, %v5026_v12 }
 0x257   :  { %v2874_v24 = vadd.f32 1.0, %v2873_v40  ;;  %v2863_v45 = vadd.f32 1.1283791, %v2862_v17  ;;  %v2953_v40 = vperm.slane %v2945_v32, 0 }
 0x258   :  { %v2843_v18 = vsel %vm2842_vm6, %v4606_v59, %v2839_v13 }
 0x259   :  { %v2848_v5 = vsel %vm2845_vm7, %v2847_v20, %v2843_v18  ;;  %4607 = vrcp.f32 %v2874_v24  ;;  %v2884_v47 = vand.u32 2147483647, %v2874_v24  ;;  %v2886_v46 = vand.u32 2147483648, %v2874_v24 }
 0x25a   :  { %v2849_v28 = vmul.f32 %v2848_v5, %v2824_v16  ;;  %vm2880_vm9 = vweird.f32 %v2874_v24  ;;  %v2864_v56 = vmul.f32 %v2863_v45, %v5030_v15 }
 0x25b   :  { %v2887_v55 = vor.u32 1.1754944e-38, %v2886_v46  ;;  %vm2885_vm11 = vcmp.eq.f32.partialorder %v2884_v47, 8.507059e+37 }
 0x25c   :  { %v2760_v21 = vpop.f32.mrf.mxu3  ;;  %v4264_v51 = vclamps-f32 %v2849_v28, 1.0 }
 0x25d   :  { %v5057_v62 = vadd.f32 %v2760_v21, %v2748_v19 }
 0x25e   :  { %v2933_v36 = vadd.f32 1.0, %v4264_v51 }
 0x25f   :  { %v5062_v43 = vmul.f32 0.70710677, %v5057_v62  ;;  %v4608_v61 = vpop.eup %4607  ;;  %v2767_v17 = vmul.f32 0.5, %v5057_v62 }
 0x260   :  { %v2937_v29 = vmul.f32 %v2933_v36, %v2765_v58  ;;  %v2876_v1 = vmul.f32 %v4608_v61, %v2874_v24  ;;  %vm2881_vm8 = vweird.f32 %v4608_v61 }
 0x261   :  { %v2892_v22 = vmul.f32 %v5062_v43, %v5062_v43  ;;  %vm2882_vm10 = vmor %vm2880_vm9, %vm2881_vm8 }
 0x262   :  { %v2877_v30 = vsub.f32 1.0, %v2876_v1  ;;  %v2956_v44 = vmul.f32 %v2952_v38, %v2937_v29  ;;  %v2946_v38 = vperm.slane %v5050_v4, 6 }
 0x263   :  { %v2893_v39 = vmin.f32 %v2892_v22, 16.0 }
 0x264   :  { %v2762_v42 = vpop.f32.mrf.mxu3  ;;  %v2878_v49 = vmul.f32 %v4608_v61, %v2877_v30  ;;  %v2959_v53 = vadd.f32 %v2956_v44, %v2955_v33  ;;  %v2954_v1 = vperm.slane %v2946_v38, 0  ;;  %v4594_v30 = vld [vmem:[#allocation2] ss:$0 sm:$0xff] }
 0x265   :  { %v2894_v52 = vmul.f32 2.1237322e-06, %v2893_v39  ;;  %v2905_v60 = vmul.f32 3.8918573e-05, %v2893_v39 }
 0x266   :  { %v2879_v59 = vadd.f32 %v4608_v61, %v2878_v49 }
 0x267   :  { %v2895_v41 = vadd.f32 0.00028619796, %v2894_v52  ;;  %v2906_v50 = vadd.f32 0.001143296, %v2905_v60 }
 0x268   :  { %v2883_v57 = vsel %vm2882_vm10, %v4608_v61, %v2879_v59 }
 0x269   :  { %v2896_v26 = vmul.f32 %v2895_v41, %v2893_v39  ;;  %v2907_v54 = vmul.f32 %v2906_v50, %v2893_v39  ;;  %v2888_v48 = vsel %vm2885_vm11, %v2887_v55, %v2883_v57 }
 0x26a   :  { %v2889_v63 = vmul.f32 %v2888_v48, %v2864_v56 }
 0x26b   :  { %v2908_v10 = vadd.f32 0.014752088, %v2907_v54  ;;  %v2897_v2 = vadd.f32 0.0036580483, %v2896_v26 }
 0x26c   :  { %v4265_v3 = vclamps-f32 %v2889_v63, 1.0 }
 0x26d   :  { %v2909_v0 = vmul.f32 %v2908_v10, %v2893_v39  ;;  %v2898_v6 = vmul.f32 %v2897_v2, %v2893_v39 }
 0x26e   :  { %v2934_v11 = vadd.f32 1.0, %v4265_v3 }
 0x26f   :  { %v2910_v8 = vadd.f32 0.112945676, %v2909_v0  ;;  %v2899_v15 = vadd.f32 0.05243302, %v2898_v6 }
 0x270   :  { %v2938_v13 = vmul.f32 %v2934_v11, %v2766_v9 }
 0x271   :  { %v2911_v7 = vmul.f32 %v2910_v8, %v2893_v39  ;;  %v2900_v19 = vmul.f32 %v2899_v15, %v2893_v39 }
 0x272   :  { %v2957_v24 = vmul.f32 %v2953_v40, %v2938_v13 }
 0x273   :  { %v2912_v20 = vadd.f32 0.4994258, %v2911_v7  ;;  %v2901_v21 = vadd.f32 0.18741608, %v2900_v19 }
 0x274   :  { %v2960_v18 = vadd.f32 %v2959_v53, %v2957_v24 }
 0x275   :  { %v2913_v14 = vmul.f32 %v2912_v20, %v2893_v39  ;;  %v2902_v5 = vmul.f32 %v2901_v21, %v2893_v39 }
 0x277   :  { %v2914_v16 = vadd.f32 1.0, %v2913_v14  ;;  %v2903_v31 = vadd.f32 1.1283791, %v2902_v5 }
 0x279   :  { %4609 = vrcp.f32 %v2914_v16  ;;  %v2926_v27 = vand.u32 2147483648, %v2914_v16  ;;  %v2924_v34 = vand.u32 2147483647, %v2914_v16  ;;  %vm2920_vm13 = vweird.f32 %v2914_v16 }
 0x27a   :  { %v2904_v23 = vmul.f32 %v2903_v31, %v5062_v43 }
 0x27b   :  { %v2927_v35 = vor.u32 1.1754944e-38, %v2926_v27  ;;  %vm2925_vm15 = vcmp.eq.f32.partialorder %v2924_v34, 8.507059e+37 }
 0x27f   :  { %v4610_v37 = vpop.eup %4609 }
 0x280   :  { %v2916_v25 = vmul.f32 %v4610_v37, %v2914_v16  ;;  %vm2921_vm12 = vweird.f32 %v4610_v37 }
 0x281   :  { %vm2922_vm14 = vmor %vm2920_vm13, %vm2921_vm12 }
 0x282   :  { %v2917_v28 = vsub.f32 1.0, %v2916_v25 }
 0x284   :  { %v2918_v12 = vmul.f32 %v4610_v37, %v2917_v28 }
 0x286   :  { %v2919_v51 = vadd.f32 %v4610_v37, %v2918_v12 }
 0x288   :  { %v2923_v58 = vsel %vm2922_vm14, %v4610_v37, %v2919_v51 }
 0x289   :  { %v2928_v36 = vsel %vm2925_vm15, %v2927_v35, %v2923_v58 }
 0x28a   :  { %v2929_v22 = vmul.f32 %v2928_v36, %v2904_v23 }
 0x28c   :  { %v4266_v61 = vclamps-f32 %v2929_v22, 1.0 }
 0x28e   :  { %v2935_v29 = vadd.f32 1.0, %v4266_v61 }
 0x290   :  { %v2939_v39 = vmul.f32 %v2935_v29, %v2767_v17 }
 0x292   :  { %v2958_v42 = vmul.f32 %v2954_v1, %v2939_v39 }
 0x294   :  { %v2961_v33 = vadd.f32 %v2960_v18, %v2958_v42 }
 0x296   :  { %2962 = vadd.xlane.f32.xlu0 %v2961_v33 }
 0x309   :  { %v2963_v52 = vpop.xlane.xlu0 %2962 }
 0x30a   :  { %v2968_v60 = vadd.f32 %v4594_v30, %v2963_v52 }
 0x30c   :  { %4611 = vtanh.f32 %v2968_v60 }
 0x312   :  { %v4612_v43 = vpop.eup %4611 }
 0x313   :  { %2971 = vst.msk [vmem:[%s5084_s7] sm:$0xff] %vm2970_vm0, %v4612_v43 }
 0x314   :  { %2976 = vsyncpa [#allocation4], 1 }
 0x315   :  { %2977 = vsyncpa [#allocation6], 1 }
 0x316   :  { %2978 = vsyncpa [#allocation9], 1 }

</bundles_post_ra>
